<compile_context>
chip_gen: v7x
topology: tpu7x:2x2x1
jax: 0.10.0
libtpu: 0.0.40
codegen_flags: <defaults>
</compile_context>

<pallas_src>
import functools

import jax
import jax.numpy as jnp
import numpy as np
from jax.experimental import pallas as pl
from jax.experimental.pallas import tpu as pltpu


def _round_up(x, m):
    return ((x + m - 1) // m) * m


# -----------------------------------------------------------------------------
# Static parameter prep (independent of x)
# -----------------------------------------------------------------------------
def _group_weights(spectral_params, in_channels, out_channels, kernel_size, n_groups):
    """Per-group masked spectral -> spatial weights, shape (G, O, C, Kh, Kw).

    wts[g, o, c, kh, kw] = spectral[c*K + kh, o*K + kw] * mask_g[c*K+kh, o*K+kw]
    (FrFT2D is a no-op on real inputs, so spatial weights == masked spectral.)
    """
    C, O, K, G = in_channels, out_channels, kernel_size, n_groups
    rows = jnp.linspace(-0.5, 0.5, K * C)
    cols = jnp.linspace(-0.5, 0.5, K * O)
    radius = jnp.sqrt(rows[:, None] ** 2 + cols[None, :] ** 2)          # (K*C, K*O)
    thr = jnp.linspace(0.0, 0.5, G + 1)
    masks = (thr[:-1, None, None] <= radius[None, :, :]) & (
        radius[None, :, :] < thr[1:, None, None]
    )                                                                    # (G, K*C, K*O)
    masked = spectral_params[None, :, :] * masks.astype(spectral_params.dtype)
    # (G, K*C, K*O) -> (G, C, Kh, O, Kw) -> (G, O, C, Kh, Kw)
    return masked.reshape(G, C, K, O, K).transpose(0, 3, 1, 2, 4)


# -----------------------------------------------------------------------------
# Pallas kernel: grid = (batch, spatial tile)
# -----------------------------------------------------------------------------
def _frfdconv_kernel(x_ref, dyn_ref, o_ref, slab_ref, *,
                     K, stride, OH, OW, S, S_TILE, C_pad):
    # x_ref   : (1, C, H, W)        whole image of this batch element
    # dyn_ref : (1, O, K*K*C_pad)   per-batch dynamic weights (pi-combine done in XLA)
    # o_ref   : (1, O, S_TILE)      lane-dense output tile
    # slab_ref: (K*K*C_pad, S_pad)  scratch: per-batch im2col slab
    st = pl.program_id(1)

    # ---- once per batch element: build the im2col slab ----------------------
    @pl.when(st == 0)
    def _prepare():
        KKC_pad, S_pad = slab_ref.shape
        if S_pad > S:
            # Zero the padded tail columns so the last tile's GEMM is deterministic.
            slab_ref[:, S:] = jnp.zeros((KKC_pad, S_pad - S), slab_ref.dtype)
        img = x_ref[0]                                        # (C, H, W), compute dtype
        C = img.shape[0]
        for kh in range(K):
            for kw in range(K):
                row0 = (kh * K + kw) * C_pad                  # sublane-aligned offset
                xs = img[:, kh:kh + stride * (OH - 1) + 1:stride,
                            kw:kw + stride * (OW - 1) + 1:stride]   # (C, OH, OW)
                xs = xs.reshape(C, S)
                if C_pad > C:                                 # pad rows -> unmasked sublanes
                    xs = jnp.concatenate(
                        [xs, jnp.zeros((C_pad - C, S), xs.dtype)], axis=0)
                slab_ref[row0:row0 + C_pad, :S] = xs

    # ---- per spatial tile: one deep MXU GEMM, lane-dense store ---------------
    s0 = pl.multiple_of(st * S_TILE, S_TILE)
    tile = slab_ref[:, pl.ds(s0, S_TILE)]                     # (K*K*C_pad, S_TILE)
    o_ref[0] = jnp.dot(dyn_ref[0], tile,
                       preferred_element_type=jnp.float32).astype(o_ref.dtype)


# -----------------------------------------------------------------------------
# Wrapper
# -----------------------------------------------------------------------------
def frfd_conv(x, spectral_params, att_w, att_b, *, out_channels, kernel_size,
              stride=1, n_groups=64, compute_dtype=jnp.bfloat16,
              out_dtype=jnp.float32, s_tile_max=2048):
    B, C, H, W = x.shape
    K, O, G = kernel_size, out_channels, n_groups
    OH = (H - K) // stride + 1
    OW = (W - K) // stride + 1
    S = OH * OW

    dsize = jnp.dtype(compute_dtype).itemsize
    osize = jnp.dtype(out_dtype).itemsize
    sub = 32 // dsize                       # sublane pack: 8 for f32, 16 for bf16
    C_pad = _round_up(C, sub)
    KKC_pad = K * K * C_pad

    # Spatial tiling: lane-dense (multiple of 128), evenly split across NT tiles.
    NT = max(1, (_round_up(S, 128) + s_tile_max - 1) // s_tile_max)
    S_TILE = _round_up((S + NT - 1) // NT, 128)
    NT = (S + S_TILE - 1) // S_TILE
    S_pad = NT * S_TILE

    # ---- static weights: masked spectral -> spatial, tap-major rows ---------
    wts = _group_weights(spectral_params.astype(jnp.float32), C, O, K, G)  # (G,O,C,Kh,Kw)
    gw = wts.transpose(0, 1, 3, 4, 2)                                      # (G,O,Kh,Kw,C)
    gw = jnp.pad(gw, ((0, 0), (0, 0), (0, 0), (0, 0), (0, C_pad - C)))
    gw = gw.reshape(G, O, KKC_pad)

    # ---- attention + pi-combine (hoisted out of the kernel, plain XLA) ------
    xf32 = x.astype(jnp.float32)
    mean_x = jnp.mean(xf32, axis=(2, 3))                                   # (B, C)
    logits = mean_x @ att_w.reshape(G, C).astype(jnp.float32).T \
             + att_b.reshape(1, G).astype(jnp.float32)
    pi = jax.nn.sigmoid(logits)                                            # (B, G)
    dyn = jnp.einsum('bg,gok->bok', pi, gw).astype(compute_dtype)          # (B,O,KKC_pad)

    xc = x.astype(compute_dtype)                    # slab is built in compute dtype

    kernel = functools.partial(_frfdconv_kernel, K=K, stride=stride, OH=OH, OW=OW,
                               S=S, S_TILE=S_TILE, C_pad=C_pad)

    cost = pl.CostEstimate(
        flops=2 * B * O * KKC_pad * S_pad,
        transcendentals=0,
        bytes_accessed=(B * C * H * W * dsize + B * O * KKC_pad * dsize
                        + B * O * S_pad * osize),
    )

    # Generation-aware VMEM budget (64 MiB/TC on v7x, 128 MiB on v5e/v6e).
    try:
        vmem_cap = int(pltpu.get_tpu_info().vmem_capacity_bytes)
    except Exception:
        vmem_cap = 64 * 2 ** 20
    vmem_est = (2 * C * H * W * dsize              # x block (double-buffered)
                + 2 * O * KKC_pad * dsize          # dyn block (double-buffered)
                + 2 * O * S_TILE * osize           # output block (double-buffered)
                + KKC_pad * S_pad * dsize          # im2col slab scratch
                + 2 * C_pad * S * dsize            # slab-build temporaries
                + (2 << 20))                       # headroom
    vmem_limit = int(min(vmem_cap, max(32 * 2 ** 20, vmem_est)))
    # TODO(synk): at very large spatial extents (e.g. 224x224 with C>=64) the
    # per-batch slab alone exceeds v7x's 64 MiB VMEM; in that regime the slab
    # should be rebuilt per OH-row tile instead of once per batch element.

    out_flat = pl.pallas_call(
        kernel,
        out_shape=jax.ShapeDtypeStruct((B, O, S_pad), out_dtype),
        grid_spec=pltpu.PrefetchScalarGridSpec(
            num_scalar_prefetch=0,
            grid=(B, NT),
            in_specs=[
                pl.BlockSpec((1, C, H, W), lambda b, s: (b, 0, 0, 0)),
                pl.BlockSpec((1, O, KKC_pad), lambda b, s: (b, 0, 0)),
            ],
            out_specs=pl.BlockSpec((1, O, S_TILE), lambda b, s: (b, 0, s)),
            scratch_shapes=[
                pltpu.VMEM((KKC_pad, S_pad), compute_dtype),   # im2col slab
            ],
        ),
        compiler_params=pltpu.CompilerParams(
            # Spatial axis stays "arbitrary": the slab is built at tile 0 of each
            # batch element and reused by its later tiles on the same core.
            dimension_semantics=("parallel", "arbitrary"),
            vmem_limit_bytes=vmem_limit,
        ),
        cost_estimate=cost,
    )(xc, dyn)

    return out_flat[:, :, :S].reshape(B, O, OH, OW)


# -----------------------------------------------------------------------------
# Pure-JAX reference (mirrors the PyTorch forward, all f32)
# -----------------------------------------------------------------------------
def frfd_conv_reference(x, spectral_params, att_w, att_b, *, out_channels,
                        kernel_size, stride=1, n_groups=64):
    B, C, H, W = x.shape
    K, O, G = kernel_size, out_channels, n_groups
    OH = (H - K) // stride + 1
    OW = (W - K) // stride + 1

    wts = _group_weights(spectral_params, C, O, K, G)          # (G, O, C, K, K)
    mean_x = jnp.mean(x, axis=(2, 3))                          # (B, C)
    pi = jax.nn.sigmoid(mean_x @ att_w.reshape(G, C).T + att_b.reshape(1, G))  # (B, G)
    dyn = jnp.einsum('bg,goikl->boikl', pi, wts)               # (B, O, C, K, K)

    out = jnp.zeros((B, O, OH, OW), jnp.float32)
    for kh in range(K):
        for kw in range(K):
            xs = x[:, :, kh:kh + stride * (OH - 1) + 1:stride,
                         kw:kw + stride * (OW - 1) + 1:stride]  # (B, C, OH, OW)
            out = out + jnp.einsum('boc,bcyx->boyx', dyn[:, :, :, kh, kw], xs)
    return out


if __name__ == "__main__":
    # Small shapes consistent with the module's forward.
    B, C_in, C_out, K, H, W = 2, 4, 8, 3, 16, 16
    G = 8          # n_groups (module default is 64; kept small here)
    stride = 1

    key = jax.random.PRNGKey(0)
    k_x, k_sp, k_aw, k_ab = jax.random.split(key, 4)
    x = jax.random.normal(k_x, (B, C_in, H, W), dtype=jnp.float32)
    spectral_params = jax.random.normal(k_sp, (K * C_in, K * C_out), dtype=jnp.float32)
    att_w = 0.1 * jax.random.normal(k_aw, (G, C_in, 1, 1), dtype=jnp.float32)
    att_b = 0.1 * jax.random.normal(k_ab, (G,), dtype=jnp.float32)

    ref = frfd_conv_reference(x, spectral_params, att_w, att_b,
                              out_channels=C_out, kernel_size=K,
                              stride=stride, n_groups=G)
    ref = jax.block_until_ready(ref)

    # 1) exact-precision path: validates kernel structure tightly.
    out_f32 = frfd_conv(x, spectral_params, att_w, att_b,
                        out_channels=C_out, kernel_size=K, stride=stride,
                        n_groups=G, compute_dtype=jnp.float32,
                        out_dtype=jnp.float32)
    out_f32 = jax.block_until_ready(out_f32)
    np.testing.assert_allclose(np.asarray(out_f32), np.asarray(ref),
                               rtol=1e-4, atol=1e-4)

    # 2) performance path: bf16 MXU operands + bf16 output, f32 accumulation.
    out_bf16 = frfd_conv(x, spectral_params, att_w, att_b,
                         out_channels=C_out, kernel_size=K, stride=stride,
                         n_groups=G, compute_dtype=jnp.bfloat16,
                         out_dtype=jnp.bfloat16)
    out_bf16 = jax.block_until_ready(out_bf16)
    np.testing.assert_allclose(np.asarray(out_bf16.astype(jnp.float32)),
                               np.asarray(ref), rtol=5e-2, atol=1e-1)

    assert out_bf16.shape == (B, C_out, (H - K) // stride + 1, (W - K) // stride + 1)
    print("KERNEL_OK")
</pallas_src>

<mosaic_0001>
module attributes {stable_mosaic.version = 11 : i64} {
  func.func @_frfdconv_kernel(%arg0: i32, %arg1: i32, %arg2: memref<1x4x16x16xf32, #tpu.memory_space<vmem>>, %arg3: memref<1x8x72xf32, #tpu.memory_space<vmem>>, %arg4: memref<1x8x256xf32, #tpu.memory_space<vmem>>, %arg5: memref<72x256xf32, #tpu.memory_space<vmem>>) attributes {dimension_semantics = [#tpu.dimension_semantics<parallel>, #tpu.dimension_semantics<arbitrary>], iteration_bounds = array<i64: 2, 1>, scalar_prefetch = 0 : i64, scratch_operands = 1 : i64, tpu.core_type = #tpu.core_type<tc>, window_params = [{transform_indices = @transform_0, window_bounds = array<i64: 1, 4, 16, 16>}, {transform_indices = @transform_1, window_bounds = array<i64: 1, 8, 72>}, {transform_indices = @transform_2, window_bounds = array<i64: 1, 8, 256>}]} {
    %c0_i32 = arith.constant 0 : i32
    %0 = arith.cmpi eq, %arg1, %c0_i32 : i32
    %1 = arith.extui %0 : i1 to i32
    %c0_i32_0 = arith.constant 0 : i32
    %2 = arith.cmpi ne, %1, %c0_i32_0 : i32
    scf.if %2 {
      %cst_7 = arith.constant 0.000000e+00 : f32
      %13 = vector.broadcast %cst_7 : f32 to vector<72x60xf32>
      %c0_8 = arith.constant 0 : index
      %c196 = arith.constant 196 : index
      %14 = vector.load %arg5[%c0_8, %c196] : memref<72x256xf32, #tpu.memory_space<vmem>>, vector<72x60xf32>
      tpu.vector_store %arg5[%c0_8, %c196], %13 {strides = array<i32>} : memref<72x256xf32, #tpu.memory_space<vmem>>, vector<72x60xf32>,
      %c0_9 = arith.constant 0 : index
      %c0_10 = arith.constant 0 : index
      %c0_11 = arith.constant 0 : index
      %c0_12 = arith.constant 0 : index
      %15 = vector.load %arg2[%c0_9, %c0_10, %c0_11, %c0_12] : memref<1x4x16x16xf32, #tpu.memory_space<vmem>>, vector<1x4x16x16xf32>
      %16 = vector.shape_cast %15 : vector<1x4x16x16xf32> to vector<4x16x16xf32>
      %17 = vector.extract_strided_slice %16 {offsets = [0, 0, 0], sizes = [4, 14, 14], strides = [1, 1, 1]} : vector<4x16x16xf32> to vector<4x14x14xf32>
      %18 = vector.shape_cast %17 : vector<4x14x14xf32> to vector<4x196xf32>
      %cst_13 = arith.constant 0.000000e+00 : f32
      %19 = vector.broadcast %cst_13 : f32 to vector<4x196xf32>
      %20 = tpu.concatenate %18, %19 in 0 : vector<4x196xf32>, vector<4x196xf32> -> vector<8x196xf32>
      %c0_14 = arith.constant 0 : index
      %c0_15 = arith.constant 0 : index
      %21 = vector.load %arg5[%c0_14, %c0_15] : memref<72x256xf32, #tpu.memory_space<vmem>>, vector<8x196xf32>
      tpu.vector_store %arg5[%c0_14, %c0_15], %20 {strides = array<i32>} : memref<72x256xf32, #tpu.memory_space<vmem>>, vector<8x196xf32>,
      %22 = vector.extract_strided_slice %16 {offsets = [0, 0, 1], sizes = [4, 14, 14], strides = [1, 1, 1]} : vector<4x16x16xf32> to vector<4x14x14xf32>
      %23 = vector.shape_cast %22 : vector<4x14x14xf32> to vector<4x196xf32>
      %cst_16 = arith.constant 0.000000e+00 : f32
      %24 = vector.broadcast %cst_16 : f32 to vector<4x196xf32>
      %25 = tpu.concatenate %23, %24 in 0 : vector<4x196xf32>, vector<4x196xf32> -> vector<8x196xf32>
      %c8 = arith.constant 8 : index
      %c0_17 = arith.constant 0 : index
      %26 = vector.load %arg5[%c8, %c0_17] : memref<72x256xf32, #tpu.memory_space<vmem>>, vector<8x196xf32>
      tpu.vector_store %arg5[%c8, %c0_17], %25 {strides = array<i32>} : memref<72x256xf32, #tpu.memory_space<vmem>>, vector<8x196xf32>,
      %27 = vector.extract_strided_slice %16 {offsets = [0, 0, 2], sizes = [4, 14, 14], strides = [1, 1, 1]} : vector<4x16x16xf32> to vector<4x14x14xf32>
      %28 = vector.shape_cast %27 : vector<4x14x14xf32> to vector<4x196xf32>
      %cst_18 = arith.constant 0.000000e+00 : f32
      %29 = vector.broadcast %cst_18 : f32 to vector<4x196xf32>
      %30 = tpu.concatenate %28, %29 in 0 : vector<4x196xf32>, vector<4x196xf32> -> vector<8x196xf32>
      %c16 = arith.constant 16 : index
      %c0_19 = arith.constant 0 : index
      %31 = vector.load %arg5[%c16, %c0_19] : memref<72x256xf32, #tpu.memory_space<vmem>>, vector<8x196xf32>
      tpu.vector_store %arg5[%c16, %c0_19], %30 {strides = array<i32>} : memref<72x256xf32, #tpu.memory_space<vmem>>, vector<8x196xf32>,
      %32 = vector.extract_strided_slice %16 {offsets = [0, 1, 0], sizes = [4, 14, 14], strides = [1, 1, 1]} : vector<4x16x16xf32> to vector<4x14x14xf32>
      %33 = vector.shape_cast %32 : vector<4x14x14xf32> to vector<4x196xf32>
      %cst_20 = arith.constant 0.000000e+00 : f32
      %34 = vector.broadcast %cst_20 : f32 to vector<4x196xf32>
      %35 = tpu.concatenate %33, %34 in 0 : vector<4x196xf32>, vector<4x196xf32> -> vector<8x196xf32>
      %c24 = arith.constant 24 : index
      %c0_21 = arith.constant 0 : index
      %36 = vector.load %arg5[%c24, %c0_21] : memref<72x256xf32, #tpu.memory_space<vmem>>, vector<8x196xf32>
      tpu.vector_store %arg5[%c24, %c0_21], %35 {strides = array<i32>} : memref<72x256xf32, #tpu.memory_space<vmem>>, vector<8x196xf32>,
      %37 = vector.extract_strided_slice %16 {offsets = [0, 1, 1], sizes = [4, 14, 14], strides = [1, 1, 1]} : vector<4x16x16xf32> to vector<4x14x14xf32>
      %38 = vector.shape_cast %37 : vector<4x14x14xf32> to vector<4x196xf32>
      %cst_22 = arith.constant 0.000000e+00 : f32
      %39 = vector.broadcast %cst_22 : f32 to vector<4x196xf32>
      %40 = tpu.concatenate %38, %39 in 0 : vector<4x196xf32>, vector<4x196xf32> -> vector<8x196xf32>
      %c32 = arith.constant 32 : index
      %c0_23 = arith.constant 0 : index
      %41 = vector.load %arg5[%c32, %c0_23] : memref<72x256xf32, #tpu.memory_space<vmem>>, vector<8x196xf32>
      tpu.vector_store %arg5[%c32, %c0_23], %40 {strides = array<i32>} : memref<72x256xf32, #tpu.memory_space<vmem>>, vector<8x196xf32>,
      %42 = vector.extract_strided_slice %16 {offsets = [0, 1, 2], sizes = [4, 14, 14], strides = [1, 1, 1]} : vector<4x16x16xf32> to vector<4x14x14xf32>
      %43 = vector.shape_cast %42 : vector<4x14x14xf32> to vector<4x196xf32>
      %cst_24 = arith.constant 0.000000e+00 : f32
      %44 = vector.broadcast %cst_24 : f32 to vector<4x196xf32>
      %45 = tpu.concatenate %43, %44 in 0 : vector<4x196xf32>, vector<4x196xf32> -> vector<8x196xf32>
      %c40 = arith.constant 40 : index
      %c0_25 = arith.constant 0 : index
      %46 = vector.load %arg5[%c40, %c0_25] : memref<72x256xf32, #tpu.memory_space<vmem>>, vector<8x196xf32>
      tpu.vector_store %arg5[%c40, %c0_25], %45 {strides = array<i32>} : memref<72x256xf32, #tpu.memory_space<vmem>>, vector<8x196xf32>,
      %47 = vector.extract_strided_slice %16 {offsets = [0, 2, 0], sizes = [4, 14, 14], strides = [1, 1, 1]} : vector<4x16x16xf32> to vector<4x14x14xf32>
      %48 = vector.shape_cast %47 : vector<4x14x14xf32> to vector<4x196xf32>
      %cst_26 = arith.constant 0.000000e+00 : f32
      %49 = vector.broadcast %cst_26 : f32 to vector<4x196xf32>
      %50 = tpu.concatenate %48, %49 in 0 : vector<4x196xf32>, vector<4x196xf32> -> vector<8x196xf32>
      %c48 = arith.constant 48 : index
      %c0_27 = arith.constant 0 : index
      %51 = vector.load %arg5[%c48, %c0_27] : memref<72x256xf32, #tpu.memory_space<vmem>>, vector<8x196xf32>
      tpu.vector_store %arg5[%c48, %c0_27], %50 {strides = array<i32>} : memref<72x256xf32, #tpu.memory_space<vmem>>, vector<8x196xf32>,
      %52 = vector.extract_strided_slice %16 {offsets = [0, 2, 1], sizes = [4, 14, 14], strides = [1, 1, 1]} : vector<4x16x16xf32> to vector<4x14x14xf32>
      %53 = vector.shape_cast %52 : vector<4x14x14xf32> to vector<4x196xf32>
      %cst_28 = arith.constant 0.000000e+00 : f32
      %54 = vector.broadcast %cst_28 : f32 to vector<4x196xf32>
      %55 = tpu.concatenate %53, %54 in 0 : vector<4x196xf32>, vector<4x196xf32> -> vector<8x196xf32>
      %c56 = arith.constant 56 : index
      %c0_29 = arith.constant 0 : index
      %56 = vector.load %arg5[%c56, %c0_29] : memref<72x256xf32, #tpu.memory_space<vmem>>, vector<8x196xf32>
      tpu.vector_store %arg5[%c56, %c0_29], %55 {strides = array<i32>} : memref<72x256xf32, #tpu.memory_space<vmem>>, vector<8x196xf32>,
      %57 = vector.extract_strided_slice %16 {offsets = [0, 2, 2], sizes = [4, 14, 14], strides = [1, 1, 1]} : vector<4x16x16xf32> to vector<4x14x14xf32>
      %58 = vector.shape_cast %57 : vector<4x14x14xf32> to vector<4x196xf32>
      %cst_30 = arith.constant 0.000000e+00 : f32
      %59 = vector.broadcast %cst_30 : f32 to vector<4x196xf32>
      %60 = tpu.concatenate %58, %59 in 0 : vector<4x196xf32>, vector<4x196xf32> -> vector<8x196xf32>
      %c64 = arith.constant 64 : index
      %c0_31 = arith.constant 0 : index
      %61 = vector.load %arg5[%c64, %c0_31] : memref<72x256xf32, #tpu.memory_space<vmem>>, vector<8x196xf32>
      tpu.vector_store %arg5[%c64, %c0_31], %60 {strides = array<i32>} : memref<72x256xf32, #tpu.memory_space<vmem>>, vector<8x196xf32>,
    } else {
    }
    %c256_i32 = arith.constant 256 : i32
    %3 = arith.muli %arg1, %c256_i32 : i32
    %4 = tpu.assume_multiple %3, 256 : i32
    %c0 = arith.constant 0 : index
    %5 = arith.index_cast %4 : i32 to index
    %6 = vector.load %arg5[%c0, %5] : memref<72x256xf32, #tpu.memory_space<vmem>>, vector<72x256xf32>
    %c0_1 = arith.constant 0 : index
    %c0_2 = arith.constant 0 : index
    %c0_3 = arith.constant 0 : index
    %7 = vector.load %arg3[%c0_1, %c0_2, %c0_3] : memref<1x8x72xf32, #tpu.memory_space<vmem>>, vector<1x8x72xf32>
    %8 = vector.shape_cast %7 : vector<1x8x72xf32> to vector<8x72xf32>
    %cst = arith.constant dense<0.000000e+00> : vector<8x256xf32>
    %9 = tpu.matmul %8, %6, %cst {dimension_numbers = #tpu.dot_dimension_numbers<[1], [0], [0], [1], [0, 0, 1, 1], [], []>} : vector<8x72xf32>, vector<72x256xf32>, vector<8x256xf32> -> vector<8x256xf32>
    %c0_4 = arith.constant 0 : index
    %c0_5 = arith.constant 0 : index
    %c0_6 = arith.constant 0 : index
    %10 = vector.load %arg4[%c0_4, %c0_5, %c0_6] : memref<1x8x256xf32, #tpu.memory_space<vmem>>, vector<1x8x256xf32>
    %11 = vector.shape_cast %10 : vector<1x8x256xf32> to vector<8x256xf32>
    %12 = vector.shape_cast %9 : vector<8x256xf32> to vector<1x8x256xf32>
    tpu.vector_store %arg4[%c0_4, %c0_5, %c0_6], %12 {strides = array<i32>} : memref<1x8x256xf32, #tpu.memory_space<vmem>>, vector<1x8x256xf32>,
    return
  }
  func.func @transform_0(%arg0: i32, %arg1: i32) -> (i32, i32, i32, i32) {
    %c0_i32 = arith.constant 0 : i32
    %c0_i32_0 = arith.constant 0 : i32
    %c0_i32_1 = arith.constant 0 : i32
    %c0_i32_2 = arith.constant 0 : i32
    return %arg0, %c0_i32, %c0_i32_0, %c0_i32_1 : i32, i32, i32, i32
  }
  func.func @transform_1(%arg0: i32, %arg1: i32) -> (i32, i32, i32) {
    %c0_i32 = arith.constant 0 : i32
    %c0_i32_0 = arith.constant 0 : i32
    %c0_i32_1 = arith.constant 0 : i32
    return %arg0, %c0_i32, %c0_i32_0 : i32, i32, i32
  }
  func.func @transform_2(%arg0: i32, %arg1: i32) -> (i32, i32, i32) {
    %c0_i32 = arith.constant 0 : i32
    %c0_i32_0 = arith.constant 0 : i32
    return %arg0, %c0_i32, %arg1 : i32, i32, i32
  }
}

</mosaic_0001>

<bundles_post_ra>
// kernel: tpu_custom_call.1
= control target key start
LH: loop header
LB: loop body
LE: loop exit
PB: predicated region body
PF: predicated region fallthrough
CT: control target
= control target key end

     0   :  { %7 = vsyncpa [#allocation4], 0  ;;  %s4169_s0 = inlined_call_operand.hbm [shape: f32[2,4,16,16], index: 0, kind: input, shape index: {}]   ;;  %s4170_s1 = inlined_call_operand.hbm [shape: f32[2,8,72], index: 1, kind: input, shape index: {}]   ;;  %s4171_s2 = inlined_call_operand.hbm [shape: f32[2,8,256], index: 2, kind: output, shape index: {}]  }
   0x1   :  { %9 = vsyncpa [#allocation4 + $0x1], 0 }
   0x2   :  { %10 = vsyncpa [#allocation7], 0 }
   0x3   :  { %12 = vsyncpa [#allocation7 + $0x1], 0 }
   0x4   :  { %13 = vsyncpa [#allocation5], 0 }
   0x5   :  { %15 = vsyncpa [#allocation5 + $0x1], 0  ;;  %s2754_s9 = smov 0   ;;  %s2756_s10 = smov 0  }
   0x6   :  { %s2758_s11 = smov 0   ;;  %s2760_s12 = smov 0  }
   0x7   :  { %s2762_s13 = smov 0   ;;  %s2764_s14 = smov 0  }
   0x8 LB: > { %s2433_s15 = sadd.s32 4294967295, %s2715_s14   ;;  %s2434_s16 = sadd.s32 4294967294, %s2715_s14   ;;  %s2715_s14 = sphi %s2764_s14, %s21_s14   ;;  %s2711_s13 = sphi %s2762_s13, %s4216_s13   ;;  %s2707_s12 = sphi %s2760_s12, %s4215_s12   ;;  %s2703_s11 = sphi %s2758_s11, %s4214_s11   ;;  %s2699_s10 = sphi %s2756_s10, %s4213_s10   ;;  %s2695_s9 = sphi %s2754_s9, %s4212_s9  }
   0x9   : > { %s33_s17 = sadd.s32 1, %s2711_s13  ;;  %s40_s18 = sadd.s32 1, %s2703_s11 }
   0xa   : > { %p35_p0 = scmp.ge.s32.totalorder %s33_s17, 2  ;;  %p47_p1 = scmp.ne.s32.totalorder %s2703_s11, %s2699_s10 }
   0xb   : > { %p48_p2 = scmp.eq.s32.totalorder %s2715_s14, 0  ;;  %p53_p3 = scmp.ne.s32.totalorder %s2699_s10, %s2695_s9 }
   0xc   : > { %s4218_s17 = smov (%p35_p0, %s33_s17), 0  ;;  %p54_p5 = scmp.eq.s32.totalorder %s2433_s15, 0 }
   0xd   : > { %p2795_p4 = por %p48_p2, %p47_p1  ;;  %s37_s20 = ssub.s32 %s2711_s13, %s4218_s17 }
   0xe   : > { %p105_p6 = scmp.eq.s32.totalorder %s2433_s15, 1  ;;  %p38_p7 = scmp.eq.s32.totalorder %s37_s20, 0 }
   0xf   : > { %p2801_p8 = por %p54_p5, %p53_p3  ;;  %p111_p10 = scmp.eq.s32.totalorder %s2434_s16, 1 }
  0x10   : > { %p2805_p9 = por %p105_p6, %p47_p1  ;;  %p2487_p13 = scmp.lt.s32.totalorder %s2715_s14, 2 }
  0x11   : > { %s4182_s21 = scalar_select %p2801_p8, 1, 0 }
  0x12   : > { %s4183_s22 = scalar_select %p2805_p9, 1, 0 }
  0x13   : > { %s2810_s23 = scalar_select %p38_p7, %s2703_s11, %s40_s18  }
  0x14   : > { %p2812_p11 = por %p111_p10, %p53_p3  ;;  %s2819_s25 = sand.u32 1, %s2703_s11  }
  0x15   : > { %s2437_s26 = sshll.u32 %s2819_s25, 6  ;;  %s2452_s27 = sshll.u32 %s2711_s13, 10 }
  0x16   : > { %s4184_s24 = scalar_select %p2812_p11, 1, 0 }
  0x17   : > { %s2826_s30 = scalar_lea.hbm %s4169_s0, %s2452_s27  ;;  %s135_s3 = scalar_lea.vmem [#allocation3], %s2437_s26 }
  0x18   : > { %s142_s4 = sshll.u32 %s135_s3, 4  ;;  %p2832_p0 = pnand %p2487_p13, %p2795_p4  ;;  %s2828_s4 = int_to_ptr.vmem [resolvable:$true] %s142_s4 }
  0x19   : > { %s132_s6 = scalar_lea.sflag [#allocation4], %s2819_s25  ;;  %s2569_s7 = scalar_lea.hbm %s2826_s30, 1024 }
  0x1a   : > { %p2570_p2 = scmp.ne.s32.totalorder %s2826_s30, %s2569_s7  ;;  %p2571_p3 = pneg %p2832_p0 }
  0x1b   : > { %s2574_s16 = scalar_lea.hbm %s4169_s0, 2048  ;;  %p2575_p4 = scmp.lt.u32.totalorder %s2826_s30, %s4169_s0 }
  0x1c   : > { %p2572_p5 = pnand %p2571_p3, %p2570_p2  ;;  %p2576_p7 = scmp.lt.u32.totalorder %s2574_s16, %s2569_s7 }
  0x1d   : > { %p2578_p13 = scmp.lt.u32.totalorder %s2569_s7, %s2826_s30 }
  0x1e   : > { %p2573_p6 = pneg %p2572_p5  ;;  %p2577_p10 = por %p2576_p7, %p2575_p4 }
  0x20   : > { %p2579_p12 = por %p2578_p13, %p2577_p10 }
  0x22   : > { %p2580_p1 = pnand %p2579_p12, %p2573_p6 }
  0x24   : > { %2583 = shalt.err (!%p2580_p1)
}
  0x25   : > { %s2584_s20 = scalar_lea.vmem %s2828_s4, 1024  ;;  %s2717_s26 = smov [#allocation3]  }
  0x26   : > { %p2585_p2 = scmp.ne.s32.totalorder %s2828_s4, %s2584_s20  ;;  %s2589_s27 = sshll.u32 %s2717_s26, 4  ;;  %s2590_s27 = int_to_ptr.vmem [resolvable:$false] %s2589_s27 }
  0x27   : > { %s2591_s28 = scalar_lea.vmem %s2590_s27, 2048  ;;  %p2592_p9 = scmp.lt.s32.totalorder %s2828_s4, %s2590_s27 }
  0x28   : > { %p2587_p5 = pnand %p2585_p2, %p2571_p3  ;;  %p2593_p4 = scmp.lt.s32.totalorder %s2591_s28, %s2584_s20 }
  0x2a   : > { %p2588_p11 = pneg %p2587_p5  ;;  %p2594_p7 = por %p2593_p4, %p2592_p9 }
  0x2c   : > { %p2595_p10 = pnand %p2594_p7, %p2588_p11 }
  0x2e   : > { %2598 = shalt.err (!%p2595_p10)
}
  0x2f   : > { %s2718_s29 = smov 128   ;;  %s2719_s3 = smov 8  }
  0x30   : > { %2479 = dma.hbm_to_vmem [thread:$0]  (!%p2832_p0), %s2826_s30, 1024, %s2828_s4, %s132_s6, %s2718_s29, %s2718_s29, %s2719_s3  }
  0x31   : > { %p168_p12 = scmp.lt.s32.totalorder %s2715_s14, 3  ;;  %s2440_s7 = sshll.u32 %s2819_s25, 3 }
  0x32   : > { %s2441_s8 = sshll.u32 %s2711_s13, 7  ;;  %p4186_p9 = scmp.ge.s32.totalorder %s2715_s14, 1 }
  0x33   : > { %s2877_s19 = scalar_lea.hbm %s4170_s1, %s2441_s8  ;;  %s156_s20 = scalar_lea.vmem [#allocation6], %s2440_s7 }
  0x34   : > { %p2870_p11 = pnand %p4186_p9, %p168_p12  ;;  %s163_s26 = sshll.u32 %s156_s20, 4  ;;  %s164_s26 = int_to_ptr.vmem [resolvable:$true] %s163_s26 }
  0x35   : > { %s153_s30 = scalar_lea.sflag [#allocation7], %s2819_s25  ;;  %s2599_s4 = scalar_lea.hbm %s2877_s19, 128 }
  0x36   : > { %s4187_s15 = scalar_select %p2870_p11, 1, 0 }
  0x37   : > { %p2600_p1 = scmp.ne.s32.totalorder %s2877_s19, %s2599_s4  ;;  %s2604_s28 = scalar_lea.hbm %s4170_s1, 256 }
  0x38   : > { %p2605_p2 = scmp.lt.u32.totalorder %s2877_s19, %s4170_s1  ;;  %p2606_p5 = scmp.lt.u32.totalorder %s2604_s28, %s2599_s4 }
  0x39   : > { %p2602_p6 = pnand %p2600_p1, %p2571_p3  ;;  %p2608_p7 = scmp.lt.u32.totalorder %s2599_s4, %s2877_s19 }
  0x3a   : > { %p2607_p4 = por %p2606_p5, %p2605_p2 }
  0x3b   : > { %p2603_p13 = pneg %p2602_p6 }
  0x3c   : > { %p2609_p10 = por %p2608_p7, %p2607_p4 }
  0x3e   : > { %p2610_p12 = pnand %p2609_p10, %p2603_p13 }
  0x40   : > { %2613 = shalt.err (!%p2610_p12)
}
  0x41   : > { %s2614_s25 = scalar_lea.vmem %s164_s26, 128  ;;  %s2720_s7 = smov [#allocation6]  }
  0x42   : > { %p2615_p9 = scmp.ne.s32.totalorder %s164_s26, %s2614_s25  ;;  %s2619_s8 = sshll.u32 %s2720_s7, 4  ;;  %s2620_s8 = int_to_ptr.vmem [resolvable:$false] %s2619_s8 }
  0x43   : > { %s2621_s16 = scalar_lea.vmem %s2620_s8, 256  ;;  %p2622_p8 = scmp.lt.s32.totalorder %s164_s26, %s2620_s8 }
  0x44   : > { %p2617_p1 = pnand %p2615_p9, %p2571_p3  ;;  %p2623_p11 = scmp.lt.s32.totalorder %s2621_s16, %s2614_s25 }
  0x46   : > { %p2618_p6 = pneg %p2617_p1  ;;  %p2624_p2 = por %p2623_p11, %p2622_p8 }
  0x48   : > { %p2625_p5 = pnand %p2624_p2, %p2618_p6 }
  0x4a   : > { %2628 = shalt.err (!%p2625_p5)
}
  0x4b   : > { %2482 = dma.hbm_to_vmem [thread:$0]  (!%p2832_p0), %s2877_s19, 128, %s164_s26, %s153_s30  }
  0x4c   : > { %p4188_p13 = scmp.ne.s32.totalorder %s4187_s15, 0 }
  0x4e   : > { %172 = sbr.rel (%p4188_p13) target bundleno = 789 (0x315), region = 28 }
  0x55   : > { %s2902_s18 = sand.u32 1, %s2699_s10   ;;  %p4189_p3 = scmp.ne.s32.totalorder %s4182_s21, 0 }
  0x56   : > { %s2443_s20 = sshll.u32 %s2902_s18, 6  ;;  %s175_s4 = scalar_lea.sflag [#allocation4], %s2902_s18 }
  0x57   : > { %s178_s6 = scalar_lea.vmem [#allocation3], %s2443_s20 }
  0x58   : > { %2682 = dma.done.wait (%p4189_p3), %s175_s4, 1024  }
  0x59   : > { %2684 = vsyncadd (%p4189_p3), %s175_s4, 4294966272  ;;  %s2444_s5 = sshll.u32 %s2902_s18, 3  ;;  %s184_s15 = scalar_lea.sflag [#allocation7], %s2902_s18 }
  0x5a   : > { %s2912_s19 = scalar_lea.vmem [#allocation6], %s2444_s5 }
  0x5b   : > { %2686 = dma.done.wait (%p4189_p3), %s184_s15, 128  }
  0x5c   : > { %2688 = vsyncadd (%p4189_p3), %s184_s15, 4294967168  ;;  %v2721_v0 = vmov 0.0   ;;  %v2722_v1 = vmov 1983009808   ;;  %v241_v3 = vlaneseq  ;;  %v2919_v4 = vld [vmem:[%s178_s6 + $0x20] sm:$0xff]  ;;  %v2923_v6 = vld [vmem:[%s178_s6 + $0x30] sm:$0xff] }
  0x5d   : > { %2301 = vmatprep.mubr.f32.mxu0 %v2721_v0  ;;  %v239_v2 = vunpack.c.l.s4 %v2722_v1  ;;  %v2921_v5 = vld [vmem:[%s178_s6] sm:$0xff]  ;;  %s2723_s26 = smov 127   ;;  %v2931_v9 = vld [vmem:[%s178_s6 + $0x10] sm:$0xff]  ;;  %v2933_v10 = vld [vmem:[%s178_s6 + $0x18] sm:$0xff]  ;;  %v902_v12 = vrot.slane %v2919_v4, 1  ;;  %v905_v13 = vrot.slane %v2923_v6, 1 }
  0x5e   : > { %v2925_v8 = vshrl.u32 %v241_v3, 7  ;;  %463 = vrot.lane.b32.xlu1 %v2919_v4, %s2723_s26  ;;  %455 = vrot.lane.b32.xlu0 %v2921_v5, %s2723_s26  ;;  %v896_v11 = vrot.slane %v2921_v5, 1  ;;  %v2938_v14 = vld [vmem:[%s178_s6 + $0x8] sm:$0xff]  ;;  %v2940_v15 = vld [vmem:[%s178_s6 + $0x38] sm:$0xff]  ;;  %vm895_vm0 = vcmask 1046528   ;;  %v899_v17 = vrot.slane %v2931_v9, 1 }
  0x5f   : > { %v240_v7 = vunpack.c.0.s8 %v239_v2  ;;  %v2942_v16 = vld [vmem:[%s178_s6 + $0x28] sm:$0xff]  ;;  %v2946_v18 = vrot.slane %v2933_v10, 1  ;;  %v236_v19 = vcombine.low %v2921_v5, %v2919_v4  ;;  %v2951_v20 = vrot.slane %v2938_v14, 1  ;;  %s2724_s21 = smov 126   ;;  %s2726_s30 = smov 14  }
  0x60   : > { %v2954_v21 = vrot.slane %v2942_v16, 1  ;;  %v2957_v22 = vrot.slane %v2940_v15, 1  ;;  %v252_v31 = vcombine.low %v2931_v9, %v2923_v6  ;;  %v237_v33 = vcombine.high %v2921_v5, %v2919_v4  ;;  %s2727_s27 = smov 28   ;;  %s2728_s28 = smov 42  }
  0x61   : > { %v2960_v23 = vsub.s32 %v240_v7, %v2925_v8  ;;  %v2963_v24 = vsel %vm895_vm0, %v899_v17, %v2946_v18  ;;  %v2970_v25 = vsel %vm895_vm0, %v896_v11, %v2951_v20  ;;  %v253_v34 = vcombine.high %v2931_v9, %v2923_v6  ;;  %s2729_s29 = smov 26   ;;  %s2730_s3 = smov 56  }
  0x62   : > { %467 = vrot.lane.b32.xlu1 %v2923_v6, %s2723_s26  ;;  %459 = vrot.lane.b32.xlu0 %v2931_v9, %s2723_s26  ;;  %v2973_v26 = vsel %vm895_vm0, %v902_v12, %v2954_v21  ;;  %v2976_v27 = vsel %vm895_vm0, %v905_v13, %v2957_v22  ;;  %v304_v35 = vcombine.low %v2938_v14, %v2942_v16  ;;  %v1553_v55 = vrot.slane %v2921_v5, 2  ;;  %s2731_s25 = smov 70   ;;  %s2732_s7 = smov 12  }
  0x63   : > { %v917_v28 = vcombine.high %v2970_v25, %v2973_v26  ;;  %v933_v29 = vcombine.high %v2963_v24, %v2976_v27  ;;  %v2987_v30 = vrot.slane %v236_v19, %v2960_v23  ;;  %v2992_v32 = vrot.slane %v252_v31, %v2960_v23  ;;  %s2733_s8 = smov 84   ;;  %s2734_s16 = smov 98  }
  0x64   : > { %v320_v36 = vcombine.low %v2933_v10, %v2940_v15  ;;  %v3011_v39 = vrot.slane %v237_v33, %v2960_v23  ;;  %v3014_v40 = vrot.slane %v253_v34, %v2960_v23  ;;  %v3017_v41 = vrot.slane %v304_v35, %v2960_v23  ;;  %s2735_s20 = smov 40   ;;  %s2736_s4 = smov 112  }
  0x65   : > { %v268_v37 = vcombine.low %v2987_v30, %v2992_v32  ;;  %v269_v38 = vcombine.high %v2987_v30, %v2992_v32  ;;  %v305_v47 = vcombine.high %v2938_v14, %v2942_v16  ;;  %v321_v48 = vcombine.high %v2933_v10, %v2940_v15  ;;  %s2737_s6 = smov 54   ;;  %s2445_s5 = sshll.u32 %s2902_s18, 4 }
  0x66   : > { %461 = vrot.lane.b32.xlu1 %v2933_v10, %s2723_s26  ;;  %457 = vrot.lane.b32.xlu0 %v2938_v14, %s2723_s26  ;;  %v3020_v42 = vrot.slane %v320_v36, %v2960_v23  ;;  %v284_v43 = vcombine.low %v3011_v39, %v3014_v40  ;;  %v285_v46 = vcombine.high %v3011_v39, %v3014_v40  ;;  %v3096_v56 = vrot.slane %v2938_v14, 2  ;;  %s212_s15 = scalar_lea.vmem [#allocation8], %s2445_s5  ;;  %p4209_p0 = scmp.ne.s32.totalorder %s4183_s22, 0 }
  0x67   : > { %v3047_v49 = vrot.slane %v305_v47, %v2960_v23  ;;  %v3050_v50 = vrot.slane %v321_v48, %v2960_v23  ;;  %v3075_v52 = vrot.slane %v917_v28, %v2960_v23  ;;  %v3078_v53 = vrot.slane %v933_v29, %v2960_v23 }
  0x68   : > { %v336_v44 = vcombine.low %v3017_v41, %v3020_v42  ;;  %v337_v45 = vcombine.high %v3017_v41, %v3020_v42  ;;  %v1556_v57 = vrot.slane %v2931_v9, 2  ;;  %v3100_v58 = vrot.slane %v2933_v10, 2 }
  0x69   : > { %v352_v51 = vcombine.low %v3047_v49, %v3050_v50  ;;  %v964_v54 = vcombine.low %v3075_v52, %v3078_v53  ;;  %vm1552_vm1 = vcmask 1045504   ;;  %v1559_v59 = vrot.slane %v2919_v4, 2 }
  0x6a   : > { %469 = vrot.lane.b32.xlu1 %v2940_v15, %s2723_s26  ;;  %465 = vrot.lane.b32.xlu0 %v2942_v16, %s2723_s26  ;;  %v3106_v60 = vrot.slane %v2942_v16, 2  ;;  %v3111_v61 = vsel %vm1552_vm1, %v1553_v55, %v3096_v56  ;;  %v3114_v62 = vsel %vm1552_vm1, %v1556_v57, %v3100_v58  ;;  %v1562_v63 = vrot.slane %v2923_v6, 2 }
  0x6b   : > { %v3118_v1 = vrot.slane %v2940_v15, 2  ;;  %v916_v7 = vcombine.low %v2970_v25, %v2973_v26  ;;  %vm218_vm2 = vcmask 1048096   ;;  %vm415_vm3 = vcmask 113664  }
  0x6c   : > { %v3125_v2 = vsel %vm1552_vm1, %v1559_v59, %v3106_v60  ;;  %219 = vst.msk [vmem:[#allocation2 + $0x8] sm:$0xff] %vm218_vm2, %v2721_v0  ;;  %220 = vst.msk [vmem:[#allocation2 + $0x18] sm:$0xff] %vm218_vm2, %v2721_v0  ;;  %vm417_vm4 = vcmask 228352   ;;  %vm419_vm5 = vcmask 343040   ;;  %vm421_vm6 = vcmask 457728  }
  0x6d   : > { %v3128_v3 = vsel %vm1552_vm1, %v1562_v63, %v3118_v1  ;;  %v3153_v11 = vrot.slane %v916_v7, %v2960_v23  ;;  %221 = vst.msk [vmem:[#allocation2 + $0x28] sm:$0xff] %vm218_vm2, %v2721_v0  ;;  %222 = vst.msk [vmem:[#allocation2 + $0x38] sm:$0xff] %vm218_vm2, %v2721_v0  ;;  %vm423_vm7 = vcmask 572416   ;;  %vm425_vm8 = vcmask 687104  }
  0x6e   : > { %679 = vrot.lane.b32.xlu1 %v2931_v9, %s2724_s21  ;;  %675 = vrot.lane.b32.xlu0 %v2921_v5, %s2724_s21  ;;  %v2725_v5 = vmov 1934713408   ;;  %v932_v9 = vcombine.low %v2963_v24, %v2976_v27  ;;  %223 = vst.msk [vmem:[#allocation2 + $0x48] sm:$0xff] %vm218_vm2, %v2721_v0  ;;  %224 = vst.msk [vmem:[#allocation2 + $0x58] sm:$0xff] %vm218_vm2, %v2721_v0  ;;  %vm433_vm9 = vcmask 97280   ;;  %vm427_vm10 = vcmask 801792  }
  0x6f   : > { %225 = vst.msk [vmem:[#allocation2 + $0x68] sm:$0xff] %vm218_vm2, %v2721_v0  ;;  %226 = vst.msk [vmem:[#allocation2 + $0x78] sm:$0xff] %vm218_vm2, %v2721_v0  ;;  %vm429_vm11 = vcmask 916480   ;;  %vm431_vm12 = vcmask 1031168   ;;  %vm441_vm13 = vcmask 1043456   ;;  %vm435_vm14 = vcmask 211968  }
  0x70   : > { %v3156_v12 = vrot.slane %v932_v9, %v2960_v23  ;;  %227 = vst.msk [vmem:[#allocation2 + $0x88] sm:$0xff] %vm218_vm2, %v2721_v0  ;;  %vm437_vm15 = vcmask 326656   ;;  %vm439_vm0 = vcmask 441344   ;;  %vm445_vm1 = vcmask 556032   ;;  %vm3865_vm2 = vmpackc.low %vm441_vm13, %vm441_vm13 }
  0x72   : > { %687 = vrot.lane.b32.xlu1 %v2923_v6, %s2724_s21  ;;  %683 = vrot.lane.b32.xlu0 %v2919_v4, %s2724_s21  ;;  %v271_v6 = vunpack.c.l.s4 %v2725_v5 }
  0x76   : > { %677 = vrot.lane.b32.xlu0 %v2938_v14, %s2724_s21  ;;  %681 = vrot.lane.b32.xlu1 %v2933_v10, %s2724_s21  ;;  %v272_v10 = vunpack.c.0.s8 %v271_v6 }
  0x78   : > { %v3163_v13 = vsub.s32 %v272_v10, %v2925_v8  ;;  %v948_v8 = vcombine.low %v3153_v11, %v3156_v12 }
  0x7a   : > { %685 = vrot.lane.b32.xlu0 %v2942_v16, %s2724_s21  ;;  %689 = vrot.lane.b32.xlu1 %v2940_v15, %s2724_s21  ;;  %v3171_v14 = vrot.slane %v268_v37, %v3163_v13  ;;  %v3179_v15 = vrot.slane %v336_v44, %v3163_v13  ;;  %v3192_v19 = vrot.slane %v948_v8, %v3163_v13 }
  0x7b   : > { %v292_v29 = vrot.slane %v284_v43, %v3163_v13  ;;  %v3224_v33 = vrot.slane %v285_v46, %v3163_v13 }
  0x7c   : > { %v300_v16 = vcombine.high %v3171_v14, %v2721_v0  ;;  %v360_v17 = vcombine.high %v3179_v15, %v2721_v0  ;;  %4190 = vst [vmem:[#allocation12_spill] sm:$0xff] %v3192_v19 }
  0x7d   : > { %v302_v30 = vcombine.high %v292_v29, %v2721_v0 }
  0x7e   : > { %1112 = vrot.lane.b32.xlu0 %v2970_v25, %s2723_s26  ;;  %1116 = vrot.lane.b32.xlu1 %v2963_v24, %s2723_s26 }
  0x82   : > { %1120 = vrot.lane.b32.xlu0 %v2973_v26, %s2723_s26  ;;  %1124 = vrot.lane.b32.xlu1 %v2976_v27, %s2723_s26 }
  0x86   : > { %1332 = vrot.lane.b32.xlu0 %v2970_v25, %s2724_s21  ;;  %1336 = vrot.lane.b32.xlu1 %v2963_v24, %s2724_s21  ;;  %v283_v24 = vrot.slane %v269_v38, %v3163_v13  ;;  %v980_v25 = vcombine.high %v3192_v19, %v2721_v0 }
  0x8a   : > { %1340 = vrot.lane.b32.xlu0 %v2973_v26, %s2724_s21  ;;  %1344 = vrot.lane.b32.xlu1 %v2976_v27, %s2724_s21  ;;  %v351_v26 = vrot.slane %v337_v45, %v3163_v13  ;;  %v301_v27 = vcombine.high %v283_v24, %v2721_v0 }
  0x8c   : > { %v361_v28 = vcombine.high %v351_v26, %v2721_v0 }
  0x8e   : > { %1114 = vrot.lane.b32.xlu0 %v2951_v20, %s2723_s26  ;;  %1118 = vrot.lane.b32.xlu1 %v2946_v18, %s2723_s26 }
  0x92   : > { %1122 = vrot.lane.b32.xlu0 %v2954_v21, %s2723_s26  ;;  %1126 = vrot.lane.b32.xlu1 %v2957_v22, %s2723_s26 }
  0x96   : > { %1334 = vrot.lane.b32.xlu0 %v2951_v20, %s2724_s21  ;;  %1338 = vrot.lane.b32.xlu1 %v2946_v18, %s2724_s21 }
  0x9a   : > { %1342 = vrot.lane.b32.xlu0 %v2954_v21, %s2724_s21  ;;  %1346 = vrot.lane.b32.xlu1 %v2957_v22, %s2724_s21 }
  0x9e   : > { %1769 = vrot.lane.b32.xlu0 %v3111_v61, %s2723_s26  ;;  %1773 = vrot.lane.b32.xlu1 %v3114_v62, %s2723_s26 }
  0xa2   : > { %1777 = vrot.lane.b32.xlu0 %v3125_v2, %s2723_s26  ;;  %1781 = vrot.lane.b32.xlu1 %v3128_v3, %s2723_s26 }
  0xa6   : > { %1771 = vrot.lane.b32.xlu0 %v3096_v56, %s2723_s26  ;;  %1775 = vrot.lane.b32.xlu1 %v3100_v58, %s2723_s26 }
  0xaa   : > { %1779 = vrot.lane.b32.xlu0 %v3106_v60, %s2723_s26  ;;  %1783 = vrot.lane.b32.xlu1 %v3118_v1, %s2723_s26  ;;  %s2327_s26 = sshll.u32 %s212_s15, 4  ;;  %s4117_s26 = int_to_ptr.vmem [resolvable:$true] %s2327_s26 }
  0xae   : > { %1989 = vrot.lane.b32.xlu0 %v3111_v61, %s2724_s21  ;;  %1993 = vrot.lane.b32.xlu1 %v3114_v62, %s2724_s21 }
  0xb2   : > { %1997 = vrot.lane.b32.xlu0 %v3125_v2, %s2724_s21  ;;  %2001 = vrot.lane.b32.xlu1 %v3128_v3, %s2724_s21 }
  0xb6   : > { %1991 = vrot.lane.b32.xlu0 %v3096_v56, %s2724_s21  ;;  %1995 = vrot.lane.b32.xlu1 %v3100_v58, %s2724_s21 }
  0xba   : > { %1999 = vrot.lane.b32.xlu0 %v3106_v60, %s2724_s21  ;;  %2003 = vrot.lane.b32.xlu1 %v3118_v1, %s2724_s21 }
  0xbe   : > { %364 = vrot.lane.b32.xlu0 %v300_v16, %s2726_s30  ;;  %396 = vrot.lane.b32.xlu1 %v360_v17, %s2724_s21 }
  0xc2   : > { %368 = vrot.lane.b32.xlu0 %v283_v24, %s2727_s27  ;;  %1044 = vrot.lane.b32.xlu1 %v980_v25, %s2726_s30 }
  0xc6   : > { %372 = vrot.lane.b32.xlu0 %v301_v27, %s2728_s28  ;;  %404 = vrot.lane.b32.xlu1 %v361_v28, %s2729_s29 }
  0xca   : > { %376 = vrot.lane.b32.xlu0 %v292_v29, %s2730_s3 }
  0xce   : > { %380 = vrot.lane.b32.xlu0 %v302_v30, %s2731_s25 }
  0xd0   : > { %v464_v31 = vpop.permute.xlu1 %463  ;;  %v456_v32 = vpop.permute.xlu0 %455 }
  0xd1   : > { %v479_v34 = vcombine.low %v456_v32, %v464_v31  ;;  %v480_v35 = vcombine.high %v456_v32, %v464_v31 }
  0xd2   : > { %400 = vrot.lane.b32.xlu0 %v351_v26, %s2732_s7 }
  0xd3   : > { %v487_v42 = vrot.slane %v479_v34, %v2960_v23  ;;  %v494_v43 = vrot.slane %v480_v35, %v2960_v23 }
  0xd4   : > { %v468_v36 = vpop.permute.xlu1 %467  ;;  %v460_v37 = vpop.permute.xlu0 %459 }
  0xd5   : > { %v495_v38 = vcombine.low %v460_v37, %v468_v36  ;;  %v496_v41 = vcombine.high %v460_v37, %v468_v36 }
  0xd6   : > { %384 = vrot.lane.b32.xlu0 %v3224_v33, %s2733_s8 }
  0xd7   : > { %v503_v44 = vrot.slane %v495_v38, %v2960_v23  ;;  %v510_v39 = vrot.slane %v496_v41, %v2960_v23 }
  0xd8   : > { %v3232_v40 = vpop.permute.xlu1 %461  ;;  %v3234_v45 = vpop.permute.xlu0 %457 }
  0xd9   : > { %v512_v46 = vcombine.high %v487_v42, %v503_v44  ;;  %v528_v47 = vcombine.high %v494_v43, %v510_v39  ;;  %v527_v57 = vcombine.low %v494_v43, %v510_v39  ;;  %v511_v7 = vcombine.low %v487_v42, %v503_v44 }
  0xdb   : > { %v526_v48 = vrot.slane %v512_v46, %v3163_v13  ;;  %v3238_v55 = vrot.slane %v528_v47, %v3163_v13  ;;  %v535_v8 = vrot.slane %v527_v57, %v3163_v13  ;;  %v3258_v28 = vrot.slane %v511_v7, %v3163_v13 }
  0xdc   : > { %v470_v59 = vpop.permute.xlu1 %469  ;;  %v466_v63 = vpop.permute.xlu0 %465 }
  0xdd   : > { %v563_v5 = vcombine.low %v3232_v40, %v470_v59  ;;  %v547_v6 = vcombine.low %v3234_v45, %v466_v63  ;;  %611 = vrot.lane.b32.xlu1 %v526_v48, %s2727_s27  ;;  %627 = vrot.lane.b32.xlu0 %v3238_v55, %s2733_s8  ;;  %4191 = vst [vmem:[#allocation13_spill] sm:$0xff] %v3258_v28 }
  0xde   : > { %v543_v37 = vcombine.high %v3258_v28, %v2721_v0  ;;  %v544_v43 = vcombine.high %v526_v48, %v2721_v0 }
  0xdf   : > { %v571_v9 = vrot.slane %v563_v5, %v2960_v23  ;;  %v555_v10 = vrot.slane %v547_v6, %v2960_v23  ;;  %v545_v5 = vcombine.high %v535_v8, %v2721_v0 }
  0xe0   : > { %v3248_v16 = vpop.permute.xlu1 %679  ;;  %v3250_v17 = vpop.permute.xlu0 %675 }
  0xe1   : > { %v579_v24 = vcombine.low %v555_v10, %v571_v9  ;;  %619 = vrot.lane.b32.xlu1 %v535_v8, %s2730_s3  ;;  %v580_v25 = vcombine.high %v555_v10, %v571_v9  ;;  %v949_v9 = vcombine.high %v3153_v11, %v3156_v12  ;;  %v564_v10 = vcombine.high %v3232_v40, %v470_v59 }
  0xe2   : > { %v303_v8 = vcombine.high %v3224_v33, %v2721_v0  ;;  %v546_v33 = vcombine.high %v3238_v55, %v2721_v0  ;;  %v359_v59 = vrot.slane %v352_v51, %v3163_v13 }
  0xe3   : > { %v594_v26 = vrot.slane %v580_v25, %v3163_v13  ;;  %v3255_v27 = vrot.slane %v579_v24, %v3163_v13  ;;  %v548_v24 = vcombine.high %v3234_v45, %v466_v63  ;;  %v578_v11 = vrot.slane %v564_v10, %v2960_v23 }
  0xe4   : > { %v688_v29 = vpop.permute.xlu1 %687  ;;  %v684_v30 = vpop.permute.xlu0 %683 }
  0xe5   : > { %v715_v31 = vcombine.low %v3248_v16, %v688_v29  ;;  %v699_v32 = vcombine.low %v3250_v17, %v684_v30  ;;  %643 = vrot.lane.b32.xlu1 %v594_v26, %s2732_s7  ;;  %v603_v34 = vcombine.high %v3255_v27, %v2721_v0  ;;  %v604_v25 = vcombine.high %v594_v26, %v2721_v0 }
  0xe6   : > { %v562_v12 = vrot.slane %v548_v24, %v2960_v23 }
  0xe7   : > { %v723_v35 = vrot.slane %v715_v31, %v2960_v23  ;;  %v707_v36 = vrot.slane %v699_v32, %v2960_v23  ;;  %639 = vrot.lane.b32.xlu0 %v603_v34, %s2724_s21  ;;  %v963_v34 = vrot.slane %v949_v9, %v3163_v13 }
  0xe8   : > { %v3270_v38 = vpop.permute.xlu0 %677  ;;  %v3272_v41 = vpop.permute.xlu1 %681  ;;  %v595_v63 = vcombine.low %v562_v12, %v578_v11 }
  0xe9   : > { %v731_v42 = vcombine.low %v707_v36, %v723_v35  ;;  %607 = vrot.lane.b32.xlu1 %v543_v37, %s2726_s30  ;;  %v732_v57 = vcombine.high %v707_v36, %v723_v35  ;;  %v716_v36 = vcombine.high %v3248_v16, %v688_v29  ;;  %v700_v37 = vcombine.high %v3250_v17, %v684_v30 }
  0xea   : > { %v602_v49 = vrot.slane %v595_v63, %v3163_v13  ;;  %v981_v17 = vcombine.high %v963_v34, %v2721_v0 }
  0xeb   : > { %v3277_v44 = vrot.slane %v731_v42, %v3163_v13  ;;  %v746_v7 = vrot.slane %v732_v57, %v3163_v13  ;;  %v3338_v42 = vrot.slane %v716_v36, %v2960_v23  ;;  %v3341_v16 = vrot.slane %v700_v37, %v2960_v23 }
  0xec   : > { %v3279_v39 = vpop.permute.xlu0 %685  ;;  %v3281_v46 = vpop.permute.xlu1 %689  ;;  %v972_v37 = vrot.slane %v964_v54, %v3163_v13 }
  0xed   : > { %4192 = vst [vmem:[#allocation14_spill] sm:$0xff] %v3277_v44  ;;  %615 = vrot.lane.b32.xlu1 %v544_v43, %s2728_s28  ;;  %v763_v47 = vcombine.high %v3277_v44, %v2721_v0  ;;  %v764_v55 = vcombine.high %v746_v7, %v2721_v0  ;;  %v767_v29 = vcombine.low %v3270_v38, %v3279_v39 }
  0xee   : > { %v783_v30 = vcombine.low %v3272_v41, %v3281_v46  ;;  %v984_v43 = vcombine.low %v2951_v20, %v2954_v21  ;;  %v747_v9 = vcombine.low %v3341_v16, %v3338_v42 }
  0xef   : > { %827 = vrot.lane.b32.xlu0 %v763_v47, %s2726_s30  ;;  %v1000_v47 = vcombine.low %v2946_v18, %v2957_v22  ;;  %v775_v10 = vrot.slane %v767_v29, %v2960_v23 }
  0xf0   : > { %v3288_v6 = vpop.permute.xlu0 %1112  ;;  %v3290_v48 = vpop.permute.xlu1 %1116  ;;  %v992_v24 = vrot.slane %v984_v43, %v2960_v23 }
  0xf1   : > { %623 = vrot.lane.b32.xlu1 %v545_v5, %s2731_s25 }
  0xf3   : > { %831 = vrot.lane.b32.xlu0 %v746_v7, %s2727_s27  ;;  %v362_v7 = vcombine.high %v359_v59, %v2721_v0 }
  0xf4   : > { %v3302_v31 = vpop.permute.xlu0 %1120  ;;  %v3304_v32 = vpop.permute.xlu1 %1124 }
  0xf5   : > { %647 = vrot.lane.b32.xlu1 %v604_v25, %s2729_s29  ;;  %v1008_v25 = vrot.slane %v1000_v47, %v2960_v23  ;;  %v1136_v11 = vcombine.low %v3288_v6, %v3302_v31  ;;  %v1152_v12 = vcombine.low %v3290_v48, %v3304_v32 }
  0xf7   : > { %388 = vrot.lane.b32.xlu0 %v303_v8, %s2734_s16  ;;  %v1016_v63 = vcombine.low %v992_v24, %v1008_v25  ;;  %v1160_v29 = vrot.slane %v1152_v12, %v2960_v23 }
  0xf8   : > { %v3311_v40 = vpop.permute.xlu0 %1332  ;;  %v3313_v45 = vpop.permute.xlu1 %1336 }
  0xf9   : > { %1048 = vrot.lane.b32.xlu1 %v963_v34, %s2727_s27 }
  0xfb   : > { %631 = vrot.lane.b32.xlu0 %v546_v33, %s2734_s16  ;;  %v755_v33 = vrot.slane %v747_v9, %v3163_v13 }
  0xfc   : > { %v3323_v26 = vpop.permute.xlu0 %1340  ;;  %v3325_v35 = vpop.permute.xlu1 %1344 }
  0xfd   : > { %408 = vrot.lane.b32.xlu1 %v359_v59, %s2735_s20  ;;  %v605_v59 = vcombine.high %v602_v49, %v2721_v0  ;;  %v1372_v47 = vcombine.low %v3313_v45, %v3325_v35 }
  0xff   : > { %835 = vrot.lane.b32.xlu0 %v764_v55, %s2728_s28 }
 0x100   : > { %v3333_v50 = vpop.permute.xlu0 %1114  ;;  %v3335_v51 = vpop.permute.xlu1 %1118 }
 0x101   : > { %651 = vrot.lane.b32.xlu1 %v602_v49, %s2735_s20  ;;  %v1356_v49 = vcombine.low %v3311_v40, %v3323_v26 }
 0x103   : > { %392 = vrot.lane.b32.xlu0 %v3179_v15, %s2736_s4  ;;  %v791_v15 = vrot.slane %v783_v30, %v2960_v23  ;;  %v765_v30 = vcombine.high %v755_v33, %v2721_v0 }
 0x104   : > { %v3364_v57 = vpop.permute.xlu0 %1122  ;;  %v3366_v5 = vpop.permute.xlu1 %1126 }
 0x105   : > { %1052 = vrot.lane.b32.xlu1 %v981_v17, %s2728_s28  ;;  %v1144_v17 = vrot.slane %v1136_v11, %v2960_v23  ;;  %v800_v43 = vcombine.high %v775_v10, %v791_v15 }
 0x107   : > { %635 = vrot.lane.b32.xlu0 %v3255_v27, %s2736_s4  ;;  %v799_v27 = vcombine.low %v775_v10, %v791_v15  ;;  %v1168_v12 = vcombine.low %v1144_v17, %v1160_v29  ;;  %v814_v10 = vrot.slane %v800_v43, %v3163_v13  ;;  %v1364_v15 = vrot.slane %v1356_v49, %v2960_v23 }
 0x108   : > { %v3378_v8 = vpop.permute.xlu0 %1334  ;;  %v3380_v34 = vpop.permute.xlu1 %1338  ;;  %v1017_v49 = vcombine.high %v992_v24, %v1008_v25 }
 0x109   : > { %412 = vrot.lane.b32.xlu1 %v362_v7, %s2737_s6  ;;  %v3408_v54 = vrot.slane %v799_v27, %v3163_v13  ;;  %v3411_v7 = vrot.slane %v1016_v63, %v3163_v13  ;;  %v3431_v43 = vrot.slane %v1168_v12, %v3163_v13 }
 0x10b   : > { %839 = vrot.lane.b32.xlu0 %v755_v33, %s2730_s3  ;;  %v1380_v33 = vrot.slane %v1372_v47, %v2960_v23  ;;  %v823_v27 = vcombine.high %v3408_v54, %v2721_v0  ;;  %4193 = vst [vmem:[#allocation15_spill] sm:$0xff] %v3431_v43  ;;  %v1200_v44 = vcombine.high %v3431_v43, %v2721_v0 }
 0x10c   : > { %v3390_v36 = vpop.permute.xlu0 %1342  ;;  %v3396_v55 = vpop.permute.xlu1 %1346  ;;  %v784_v43 = vcombine.high %v3272_v41, %v3281_v46 }
 0x10d   : > { %655 = vrot.lane.b32.xlu1 %v605_v59, %s2737_s6  ;;  %v1040_v59 = vcombine.high %v3411_v7, %v2721_v0  ;;  %v1388_v47 = vcombine.low %v1364_v15, %v1380_v33 }
 0x10f   : > { %843 = vrot.lane.b32.xlu0 %v765_v30, %s2731_s25  ;;  %v982_v30 = vcombine.high %v972_v37, %v2721_v0  ;;  %v3446_v24 = vrot.slane %v1388_v47, %v3163_v13  ;;  %v1169_v47 = vcombine.high %v1144_v17, %v1160_v29  ;;  %v985_v17 = vcombine.high %v2951_v20, %v2954_v21 }
 0x110   : > { %v3413_v9 = vpop.permute.xlu0 %1769  ;;  %v3415_v11 = vpop.permute.xlu1 %1773  ;;  %v1389_v29 = vcombine.high %v1364_v15, %v1380_v33 }
 0x111   : > { %1056 = vrot.lane.b32.xlu1 %v972_v37, %s2730_s3  ;;  %v748_v37 = vcombine.high %v3341_v16, %v3338_v42  ;;  %4194 = vst [vmem:[#allocation16_spill] sm:$0xff] %v3446_v24  ;;  %v999_v20 = vrot.slane %v985_v17, %v2960_v23 }
 0x113   : > { %863 = vrot.lane.b32.xlu0 %v814_v10, %s2732_s7 }
 0x114   : > { %v3426_v63 = vpop.permute.xlu0 %1777  ;;  %v3433_v4 = vpop.permute.xlu1 %1781 }
 0x115   : > { %859 = vrot.lane.b32.xlu1 %v823_v27, %s2724_s21  ;;  %v1031_v27 = vrot.slane %v1017_v49, %v3163_v13 }
 0x117   : > { %1076 = vrot.lane.b32.xlu0 %v1040_v59, %s2724_s21  ;;  %v762_v59 = vrot.slane %v748_v37, %v3163_v13  ;;  %v768_v37 = vcombine.high %v3270_v38, %v3279_v39  ;;  %v1001_v38 = vcombine.high %v2946_v18, %v2957_v22  ;;  %v798_v39 = vrot.slane %v784_v43, %v2960_v23 }
 0x118   : > { %v3436_v19 = vpop.permute.xlu0 %1771  ;;  %v3448_v25 = vpop.permute.xlu1 %1775  ;;  %v1403_v22 = vrot.slane %v1389_v29, %v3163_v13  ;;  %v1589_v29 = vcombine.low %v3114_v62, %v3128_v3 }
 0x119   : > { %1060 = vrot.lane.b32.xlu1 %v982_v30, %s2731_s25  ;;  %v1420_v30 = vcombine.high %v3446_v24, %v2721_v0  ;;  %v824_v24 = vcombine.high %v814_v10, %v2721_v0  ;;  %v782_v41 = vrot.slane %v768_v37, %v2960_v23  ;;  %v1015_v21 = vrot.slane %v1001_v38, %v2960_v23 }
 0x11a   : > { %v1421_v38 = vcombine.high %v1403_v22, %v2721_v0 }
 0x11b   : > { %1264 = vrot.lane.b32.xlu0 %v1200_v44, %s2726_s30  ;;  %v4195_v44 = vcombine.high %v3075_v52, %v3078_v53  ;;  %v1183_v52 = vrot.slane %v1169_v47, %v3163_v13  ;;  %v1041_v53 = vcombine.high %v1031_v27, %v2721_v0  ;;  %v815_v43 = vcombine.low %v782_v41, %v798_v39 }
 0x11c   : > { %v3450_v12 = vpop.permute.xlu0 %1779  ;;  %v3464_v49 = vpop.permute.xlu1 %1783  ;;  %v1032_v33 = vcombine.low %v999_v20, %v1015_v21 }
 0x11d   : > { %1080 = vrot.lane.b32.xlu1 %v1031_v27, %s2732_s7  ;;  %v979_v42 = vrot.slane %v4195_v44, %v3163_v13  ;;  %v766_v27 = vcombine.high %v762_v59, %v2721_v0  ;;  %v1153_v44 = vcombine.high %v3290_v48, %v3304_v32  ;;  %v1357_v48 = vcombine.high %v3311_v40, %v3323_v26 }
 0x11e   : > { %v1039_v37 = vrot.slane %v1032_v33, %v3163_v13  ;;  %v1373_v32 = vcombine.high %v3313_v45, %v3325_v35  ;;  %v1424_v40 = vcombine.low %v3378_v8, %v3390_v36  ;;  %v1440_v26 = vcombine.low %v3380_v34, %v3396_v55 }
 0x11f   : > { %847 = vrot.lane.b32.xlu0 %v762_v59, %s2733_s8  ;;  %v983_v18 = vcombine.high %v979_v42, %v2721_v0  ;;  %v822_v59 = vrot.slane %v815_v43, %v3163_v13  ;;  %v1573_v35 = vcombine.low %v3111_v61, %v3125_v2 }
 0x120   : > { %v3461_v16 = vpop.permute.xlu0 %1989  ;;  %v3484_v46 = vpop.permute.xlu1 %1993  ;;  %v1387_v21 = vrot.slane %v1373_v32, %v2960_v23  ;;  %v1448_v43 = vrot.slane %v1440_v26, %v2960_v23 }
 0x121   : > { %1484 = vrot.lane.b32.xlu1 %v1420_v30, %s2726_s30  ;;  %v1137_v30 = vcombine.high %v3288_v6, %v3302_v31  ;;  %v3518_v6 = vrot.slane %v1153_v44, %v2960_v23  ;;  %v1204_v31 = vcombine.low %v3333_v50, %v3364_v57  ;;  %v1042_v44 = vcombine.high %v1039_v37, %v2721_v0 }
 0x123   : > { %1064 = vrot.lane.b32.xlu0 %v979_v42, %s2733_s8  ;;  %v1201_v42 = vcombine.high %v1183_v52, %v2721_v0  ;;  %v3515_v17 = vrot.slane %v1137_v30, %v2960_v23  ;;  %v1212_v20 = vrot.slane %v1204_v31, %v2960_v23 }
 0x124   : > { %v3472_v28 = vpop.permute.xlu0 %1997  ;;  %v3498_v15 = vpop.permute.xlu1 %2001 }
 0x125   : > { %867 = vrot.lane.b32.xlu1 %v824_v24, %s2729_s29  ;;  %v1184_v39 = vcombine.low %v3515_v17, %v3518_v6 }
 0x127   : > { %1268 = vrot.lane.b32.xlu0 %v1183_v52, %s2727_s27  ;;  %v1220_v52 = vcombine.low %v3335_v51, %v3366_v5 }
 0x128   : > { %v3486_v10 = vpop.permute.xlu0 %1991 }
 0x129   : > { %1084 = vrot.lane.b32.xlu1 %v1041_v53, %s2729_s29  ;;  %v3511_v53 = vpop.permute.xlu1 %1995 }
 0x12a   : > { %4196 = vst [vmem:[#allocation17_spill] sm:$0xff] %v3511_v53 }
 0x12b   : > { %851 = vrot.lane.b32.xlu0 %v766_v27, %s2734_s16  ;;  %v3549_v27 = vrot.slane %v1357_v48, %v2960_v23  ;;  %v1597_v48 = vrot.slane %v1589_v29, %v2960_v23 }
 0x12c   : > { %v3495_v24 = vpop.permute.xlu0 %1999 }
 0x12d   : > { %1488 = vrot.lane.b32.xlu1 %v1403_v22, %s2727_s27  ;;  %v3540_v45 = vpop.permute.xlu1 %2003  ;;  %v1432_v22 = vrot.slane %v1424_v40, %v2960_v23 }
 0x12e   : > { %4197 = vst [vmem:[#allocation18_spill] sm:$0xff] %v3540_v45 }
 0x12f   : > { %1068 = vrot.lane.b32.xlu0 %v983_v18, %s2734_s16  ;;  %v1228_v18 = vrot.slane %v1220_v52, %v2960_v23  ;;  %v1456_v52 = vcombine.low %v1432_v22, %v1448_v43 }
 0x130   : > { %v3507_v47 = vpop.permute.xlu0 %364 }
 0x131   : > { %871 = vrot.lane.b32.xlu1 %v822_v59, %s2735_s20  ;;  %v3560_v30 = vpop.permute.xlu1 %396  ;;  %v1236_v31 = vcombine.low %v1212_v20, %v1228_v18  ;;  %v1237_v32 = vcombine.high %v1212_v20, %v1228_v18  ;;  %v3587_v18 = vrot.slane %v1456_v52, %v3163_v13  ;;  %v1457_v52 = vcombine.high %v1432_v22, %v1448_v43 }
 0x133   : > { %1272 = vrot.lane.b32.xlu0 %v1201_v42, %s2728_s28  ;;  %v1581_v42 = vrot.slane %v1573_v35, %v2960_v23  ;;  %v1251_v20 = vrot.slane %v1237_v32, %v3163_v13  ;;  %v1480_v32 = vcombine.high %v3587_v18, %v2721_v0  ;;  %v1471_v22 = vrot.slane %v1457_v52, %v3163_v13 }
 0x134   : > { %v3530_v41 = vpop.permute.xlu0 %368 }
 0x135   : > { %1088 = vrot.lane.b32.xlu1 %v1039_v37, %s2735_s20  ;;  %v1605_v40 = vcombine.low %v1581_v42, %v1597_v48  ;;  %v1809_v37 = vcombine.low %v3415_v11, %v3433_v4  ;;  %v3577_v35 = vpop.permute.xlu1 %1044 }
 0x136   : > { %4198 = vst [vmem:[#allocation19_spill] sm:$0xff] %v3577_v35 }
 0x137   : > { %855 = vrot.lane.b32.xlu0 %v3408_v54, %s2736_s4  ;;  %v825_v54 = vcombine.high %v822_v59, %v2721_v0  ;;  %v1192_v59 = vrot.slane %v1184_v39, %v3163_v13  ;;  %v1793_v39 = vcombine.low %v3413_v9, %v3426_v63 }
 0x138   : > { %v3558_v33 = vpop.permute.xlu0 %372 }
 0x139   : > { %1492 = vrot.lane.b32.xlu1 %v1421_v38, %s2728_s28  ;;  %v1202_v38 = vcombine.high %v1192_v59, %v2721_v0  ;;  %v3599_v35 = vpop.permute.xlu1 %404 }
 0x13b   : > { %1072 = vrot.lane.b32.xlu0 %v3411_v7, %s2736_s4  ;;  %v1404_v7 = vcombine.low %v3549_v27, %v1387_v21 }
 0x13c   : > { %v3575_v26 = vpop.permute.xlu0 %376 }
 0x13d   : > { %875 = vrot.lane.b32.xlu1 %v825_v54, %s2737_s6  ;;  %v1412_v29 = vrot.slane %v1404_v7, %v3163_v13  ;;  %v3582_v54 = vrot.slane %v1236_v31, %v3163_v13  ;;  %v3595_v7 = vrot.slane %v1605_v40, %v3163_v13  ;;  %v1185_v40 = vcombine.high %v3515_v17, %v3518_v6 }
 0x13f   : > { %1276 = vrot.lane.b32.xlu0 %v1192_v59, %s2730_s3  ;;  %v1801_v59 = vrot.slane %v1793_v39, %v2960_v23  ;;  %v1637_v53 = vcombine.high %v3595_v7, %v2721_v0 }
 0x140   : > { %v3597_v31 = vpop.permute.xlu0 %380 }
 0x141   : > { %1092 = vrot.lane.b32.xlu1 %v1042_v44, %s2737_s6  ;;  %v1817_v44 = vrot.slane %v1809_v37, %v2960_v23  ;;  %v1422_v37 = vcombine.high %v1412_v29, %v2721_v0 }
 0x143   : > { %1280 = vrot.lane.b32.xlu0 %v1202_v38, %s2731_s25  ;;  %v1260_v38 = vcombine.high %v3582_v54, %v2721_v0  ;;  %v1825_v39 = vcombine.low %v1801_v59, %v1817_v44 }
 0x144   : > { %v3611_v45 = vpop.permute.xlu0 %400 }
 0x145   : > { %1496 = vrot.lane.b32.xlu1 %v1412_v29, %s2730_s3  ;;  %v3618_v43 = vrot.slane %v1825_v39, %v3163_v13  ;;  %v1405_v29 = vcombine.high %v3549_v27, %v1387_v21  ;;  %v1205_v27 = vcombine.high %v3333_v50, %v3364_v57  ;;  %v1221_v21 = vcombine.high %v3335_v51, %v3366_v5 }
 0x146   : > { %v1425_v50 = vcombine.high %v3378_v8, %v3390_v36  ;;  %v1441_v51 = vcombine.high %v3380_v34, %v3396_v55  ;;  %v1826_v57 = vcombine.high %v1801_v59, %v1817_v44  ;;  %v1574_v44 = vcombine.high %v3111_v61, %v3125_v2 }
 0x147   : > { %1300 = vrot.lane.b32.xlu0 %v1251_v20, %s2732_s7  ;;  %v1857_v6 = vcombine.high %v3618_v43, %v2721_v0  ;;  %v1419_v52 = vrot.slane %v1405_v29, %v3163_v13  ;;  %v1219_v29 = vrot.slane %v1205_v27, %v2960_v23 }
 0x148   : > { %v1455_v8 = vrot.slane %v1441_v51, %v2960_v23  ;;  %v1840_v34 = vrot.slane %v1826_v57, %v3163_v13  ;;  %v1657_v57 = vcombine.low %v3100_v58, %v3118_v1 }
 0x149   : > { %1296 = vrot.lane.b32.xlu1 %v1260_v38, %s2724_s21  ;;  %v1423_v59 = vcombine.high %v1419_v52, %v2721_v0 }
 0x14b   : > { %1516 = vrot.lane.b32.xlu0 %v1480_v32, %s2724_s21  ;;  %v1199_v32 = vrot.slane %v1185_v40, %v3163_v13  ;;  %v1261_v40 = vcombine.high %v1251_v20, %v2721_v0  ;;  %v1481_v20 = vcombine.high %v1471_v22, %v2721_v0 }
 0x14d   : > { %1500 = vrot.lane.b32.xlu1 %v1422_v37, %s2731_s25  ;;  %v1606_v37 = vcombine.high %v1581_v42, %v1597_v48  ;;  %v1203_v27 = vcombine.high %v1199_v32, %v2721_v0 }
 0x14f   : > { %v3613_v38 = vpop.permute.xlu1 %611  ;;  %1701 = vrot.lane.b32.xlu0 %v1637_v53, %s2726_s30  ;;  %v3628_v53 = vpop.permute.xlu0 %384  ;;  %v1620_v42 = vrot.slane %v1606_v37, %v3163_v13 }
 0x151   : > { %1520 = vrot.lane.b32.xlu1 %v1471_v22, %s2732_s7  ;;  %v1590_v22 = vcombine.high %v3114_v62, %v3128_v3  ;;  %v416_v62 = vsel %vm415_vm3, %v3171_v14, %v3507_v47  ;;  %v1794_v14 = vcombine.high %v3413_v9, %v3426_v63  ;;  %v1810_v47 = vcombine.high %v3415_v11, %v3433_v4  ;;  %v4199_v63 = vld [vmem:[#allocation13_spill] sm:$0xff] }
 0x152   : > { %v1861_v9 = vcombine.low %v3436_v19, %v3450_v12  ;;  %v1877_v4 = vcombine.low %v3448_v25, %v3464_v49 }
 0x153   : > { %v3623_v17 = vpop.permute.xlu1 %619  ;;  %1284 = vrot.lane.b32.xlu0 %v1199_v32, %s2733_s8  ;;  %v3641_v48 = vpop.permute.xlu0 %627  ;;  %v3680_v61 = vrot.slane %v1590_v22, %v2960_v23  ;;  %v3722_v22 = vrot.slane %v1810_v47, %v2960_v23 }
 0x155   : > { %1921 = vrot.lane.b32.xlu1 %v1857_v6, %s2726_s30  ;;  %v1235_v6 = vrot.slane %v1221_v21, %v2960_v23  ;;  %v1439_v21 = vrot.slane %v1425_v50, %v2960_v23  ;;  %v1638_v50 = vcombine.high %v1620_v42, %v2721_v0 }
 0x157   : > { %v3636_v39 = vpop.permute.xlu1 %643  ;;  %1504 = vrot.lane.b32.xlu0 %v1419_v52, %s2733_s8  ;;  %v1472_v32 = vcombine.low %v1439_v21, %v1455_v8  ;;  %v3677_v52 = vrot.slane %v1574_v44, %v2960_v23  ;;  %v3719_v44 = vrot.slane %v1794_v14, %v2960_v23 }
 0x159   : > { %1304 = vrot.lane.b32.xlu1 %v1261_v40, %s2729_s29  ;;  %v3652_v37 = vpop.permute.xlu0 %639  ;;  %v1252_v40 = vcombine.low %v1219_v29, %v1235_v6  ;;  %v1479_v3 = vrot.slane %v1472_v32, %v3163_v13  ;;  %v1621_v8 = vcombine.low %v3677_v52, %v3680_v61 }
 0x15b   : > { %v608_v5 = vpop.permute.xlu1 %607  ;;  %1705 = vrot.lane.b32.xlu0 %v1620_v42, %s2727_s27  ;;  %v1259_v6 = vrot.slane %v1252_v40, %v3163_v13  ;;  %v1641_v42 = vcombine.low %v3096_v56, %v3106_v60  ;;  %v1858_v40 = vcombine.high %v1840_v34, %v2721_v0 }
 0x15d   : > { %1524 = vrot.lane.b32.xlu1 %v1481_v20, %s2729_s29 }
 0x15f   : > { %v616_v36 = vpop.permute.xlu1 %615  ;;  %1288 = vrot.lane.b32.xlu0 %v1203_v27, %s2734_s16  ;;  %v418_v27 = vsel %vm417_vm4, %v416_v62, %v3530_v41  ;;  %v1649_v41 = vrot.slane %v1641_v42, %v2960_v23  ;;  %v3733_v42 = vrot.slane %v1861_v9, %v2960_v23 }
 0x160   : > { %v420_v11 = vsel %vm419_vm5, %v418_v27, %v3558_v33  ;;  %v1629_v33 = vrot.slane %v1621_v8, %v3163_v13 }
 0x161   : > { %1925 = vrot.lane.b32.xlu1 %v1840_v34, %s2727_s27  ;;  %v3661_v55 = vpop.permute.xlu0 %827 }
 0x163   : > { %v3668_v29 = vpop.permute.xlu1 %623  ;;  %1508 = vrot.lane.b32.xlu0 %v1423_v59, %s2734_s16  ;;  %v1665_v59 = vrot.slane %v1657_v57, %v2960_v23  ;;  %v3736_v57 = vrot.slane %v1877_v4, %v2960_v23 }
 0x165   : > { %1308 = vrot.lane.b32.xlu1 %v1259_v6, %s2735_s20  ;;  %v3674_v51 = vpop.permute.xlu0 %831  ;;  %v1673_v27 = vcombine.low %v1649_v41, %v1665_v59  ;;  %v1893_v4 = vcombine.low %v3733_v42, %v3736_v57 }
 0x167   : > { %v3685_v2 = vpop.permute.xlu1 %647  ;;  %1709 = vrot.lane.b32.xlu0 %v1638_v50, %s2728_s28  ;;  %v1262_v50 = vcombine.high %v1259_v6, %v2721_v0 }
 0x169   : > { %1528 = vrot.lane.b32.xlu1 %v1479_v3, %s2735_s20  ;;  %v389_v20 = vpop.permute.xlu0 %388 }
 0x16b   : > { %v3700_v21 = vpop.permute.xlu1 %1048  ;;  %1292 = vrot.lane.b32.xlu0 %v3582_v54, %s2736_s4  ;;  %v658_v54 = vsel %vm415_vm3, %v4199_v63, %v608_v5  ;;  %v422_v5 = vsel %vm421_vm6, %v420_v11, %v3575_v26  ;;  %v1639_v26 = vcombine.high %v1629_v33, %v2721_v0 }
 0x16c   : > { %v659_v62 = vsel %vm417_vm4, %v658_v54, %v3613_v38  ;;  %v1841_v38 = vcombine.low %v3719_v44, %v3722_v22  ;;  %v424_v14 = vsel %vm423_vm7, %v422_v5, %v3597_v31 }
 0x16d   : > { %1929 = vrot.lane.b32.xlu1 %v1858_v40, %s2728_s28  ;;  %v632_v34 = vpop.permute.xlu0 %631  ;;  %v1674_v40 = vcombine.high %v1649_v41, %v1665_v59  ;;  %v426_v8 = vsel %vm425_vm8, %v424_v14, %v3628_v53  ;;  %v3760_v41 = vrot.slane %v1673_v27, %v3163_v13  ;;  %v1622_v27 = vcombine.high %v3677_v52, %v3680_v61 }
 0x16e   : > { %v428_v11 = vsel %vm427_vm10, %v426_v8, %v389_v20  ;;  %v1849_v20 = vrot.slane %v1841_v38, %v3163_v13  ;;  %v1894_v52 = vcombine.high %v3733_v42, %v3736_v57  ;;  %v1842_v42 = vcombine.high %v3719_v44, %v3722_v22 }
 0x16f   : > { %v409_v32 = vpop.permute.xlu1 %408  ;;  %1512 = vrot.lane.b32.xlu0 %v3587_v18, %s2736_s4  ;;  %v660_v18 = vsel %vm419_vm5, %v659_v62, %v616_v36  ;;  %v1482_v36 = vcombine.high %v1479_v3, %v2721_v0  ;;  %v1688_v63 = vrot.slane %v1674_v40, %v3163_v13  ;;  %v1636_v40 = vrot.slane %v1622_v27, %v3163_v13 }
 0x170   : > { %v661_v9 = vsel %vm421_vm6, %v660_v18, %v3623_v17  ;;  %v434_v17 = vsel %vm433_vm9, %v3560_v30, %v3611_v45  ;;  %v2013_v57 = vcombine.low %v3461_v16, %v3472_v28 }
 0x171   : > { %1312 = vrot.lane.b32.xlu1 %v1262_v50, %s2737_s6  ;;  %v3740_v6 = vpop.permute.xlu0 %835  ;;  %v662_v31 = vsel %vm423_vm7, %v661_v9, %v3668_v29  ;;  %v436_v5 = vsel %vm435_vm14, %v434_v17, %v3599_v35  ;;  %v667_v35 = vsel %vm433_vm9, %v3652_v37, %v3636_v39  ;;  %v1642_v9 = vcombine.high %v3096_v56, %v3106_v60 }
 0x172   : > { %v663_v54 = vsel %vm425_vm8, %v662_v31, %v3641_v48  ;;  %v438_v48 = vsel %vm437_vm15, %v436_v5, %v409_v32  ;;  %v1698_v60 = vcombine.high %v1688_v63, %v2721_v0  ;;  %v2021_v44 = vrot.slane %v2013_v57, %v2960_v23 }
 0x173   : > { %v652_v47 = vpop.permute.xlu1 %651  ;;  %1713 = vrot.lane.b32.xlu0 %v1629_v33, %s2730_s3  ;;  %v664_v50 = vsel %vm427_vm10, %v663_v54, %v632_v34  ;;  %v3782_v33 = vrot.slane %v1893_v4, %v3163_v13  ;;  %v1862_v17 = vcombine.high %v3436_v19, %v3450_v12  ;;  %v1640_v54 = vcombine.high %v1636_v40, %v2721_v0 }
 0x175   : > { %1532 = vrot.lane.b32.xlu1 %v1482_v36, %s2737_s6  ;;  %v393_v3 = vpop.permute.xlu0 %392  ;;  %v1917_v14 = vcombine.high %v3782_v33, %v2721_v0  ;;  %v668_v36 = vsel %vm435_vm14, %v667_v35, %v3685_v2  ;;  %v1658_v2 = vcombine.high %v3100_v58, %v3118_v1  ;;  %v1908_v58 = vrot.slane %v1894_v52, %v3163_v13 }
 0x176   : > { %v430_v53 = vsel %vm429_vm11, %v428_v11, %v393_v3  ;;  %v669_v61 = vsel %vm437_vm15, %v668_v36, %v652_v47  ;;  %v2029_v47 = vcombine.low %v3484_v46, %v3498_v15  ;;  %v1656_v1 = vrot.slane %v1642_v9, %v2960_v23 }
 0x177   : > { %v3768_v59 = vsel %vm431_vm12, %v430_v53, %v3560_v30  ;;  %v3770_v29 = vpop.permute.xlu1 %1052  ;;  %1717 = vrot.lane.b32.xlu0 %v1639_v26, %s2731_s25  ;;  %v1697_v30 = vcombine.high %v3760_v41, %v2721_v0  ;;  %v1856_v3 = vrot.slane %v1842_v42, %v3163_v13  ;;  %v1672_v53 = vrot.slane %v1658_v2, %v2960_v23  ;;  %v4202_v2 = vld [vmem:[#allocation18_spill] sm:$0xff]  ;;  %v4203_v42 = vld [vmem:[#allocation17_spill] sm:$0xff] }
 0x178   : > { %v2037_v22 = vrot.slane %v2029_v47, %v2960_v23  ;;  %v1876_v19 = vrot.slane %v1862_v17, %v2960_v23  ;;  %v2097_v57 = vcombine.low %v4203_v42, %v4202_v2 }
 0x179   : > { %1933 = vrot.lane.b32.xlu1 %v1849_v20, %s2730_s3  ;;  %v636_v45 = vpop.permute.xlu0 %635  ;;  %v1860_v35 = vcombine.high %v1856_v3, %v2721_v0 }
 0x17a   : > { %v665_v62 = vsel %vm429_vm11, %v664_v50, %v636_v45  ;;  %v2045_v50 = vcombine.low %v2021_v44, %v2037_v22 }
 0x17b   : > { %v3790_v34 = vsel %vm431_vm12, %v665_v62, %v3652_v37  ;;  %v413_v18 = vpop.permute.xlu1 %412  ;;  %1737 = vrot.lane.b32.xlu0 %v1688_v63, %s2732_s7  ;;  %v1859_v37 = vcombine.high %v1849_v20, %v2721_v0  ;;  %v1878_v20 = vcombine.high %v3448_v25, %v3464_v49  ;;  %v1689_v62 = vcombine.low %v1656_v1, %v1672_v53 }
 0x17c   : > { %v440_v26 = vsel %vm439_vm0, %v438_v48, %v413_v18  ;;  %v1918_v49 = vcombine.high %v1908_v58, %v2721_v0 }
 0x17d   : > { %v443_v38 = vsel %vm441_vm13, %v440_v26, 0.0  ;;  %1733 = vrot.lane.b32.xlu1 %v1697_v30, %s2724_s21  ;;  %v3801_v32 = vpop.permute.xlu0 %839  ;;  %v1892_v12 = vrot.slane %v1878_v20, %v2960_v23  ;;  %v2557_v26 = vpack.c.bf16 %v3790_v34, %v3768_v59  ;;  %v2030_v59 = vcombine.high %v3484_v46, %v3498_v15 }
 0x17e   : > { %446 = vst.msk [vmem:[#allocation2 + $0x8] sm:$0xff] %vm445_vm1, %v443_v38  ;;  %v1696_v38 = vrot.slane %v1689_v62, %v3163_v13  ;;  %v2081_v15 = vcombine.low %v3486_v10, %v3495_v24 }
 0x17f   : > { %v656_v39 = vpop.permute.xlu1 %655  ;;  %1953 = vrot.lane.b32.xlu0 %v1917_v14, %s2724_s21  ;;  %v3876_v14 = vrot.slane %v2045_v50, %v3163_v13  ;;  %v1909_v36 = vcombine.low %v1876_v19, %v1892_v12  ;;  %v2082_v50 = vcombine.high %v3486_v10, %v3495_v24 }
 0x180   : > { %v670_v8 = vsel %vm439_vm0, %v669_v61, %v656_v39  ;;  %v2014_v61 = vcombine.high %v3461_v16, %v3472_v28  ;;  %v3897_v28 = vrot.slane %v2030_v59, %v2960_v23  ;;  %v2046_v16 = vcombine.high %v2021_v44, %v2037_v22  ;;  %v4206_v59 = vld [vmem:[#allocation12_spill] sm:$0xff] }
 0x181   : > { %v672_v4 = vsel %vm441_vm13, %v670_v8, 0.0  ;;  %1937 = vrot.lane.b32.xlu1 %v1859_v37, %s2731_s25  ;;  %v3827_v31 = vpop.permute.xlu0 %843  ;;  %v2077_v39 = vcombine.high %v3876_v14, %v2721_v0  ;;  %v1699_v8 = vcombine.high %v1696_v38, %v2721_v0  ;;  %v2089_v44 = vrot.slane %v2081_v15, %v2960_v23 }
 0x182   : > { %674 = vst.msk [vmem:[#allocation2 + $0x18] sm:$0xff] %vm445_vm1, %v672_v4  ;;  %v3894_v9 = vrot.slane %v2014_v61, %v2960_v23  ;;  %v2060_v1 = vrot.slane %v2046_v16, %v3163_v13  ;;  %v2105_v22 = vrot.slane %v2097_v57, %v2960_v23  ;;  %v2096_v24 = vrot.slane %v2082_v50, %v2960_v23 }
 0x183   : > { %v3830_v56 = vpop.permute.xlu1 %1056  ;;  %1721 = vrot.lane.b32.xlu0 %v1636_v40, %s2733_s8  ;;  %v1916_v40 = vrot.slane %v1909_v36, %v3163_v13 }
 0x184   : > { %v2061_v4 = vcombine.low %v3894_v9, %v3897_v28  ;;  %v2113_v20 = vcombine.low %v2089_v44, %v2105_v22  ;;  %v2062_v61 = vcombine.high %v3894_v9, %v3897_v28 }
 0x185   : > { %1957 = vrot.lane.b32.xlu1 %v1908_v58, %s2732_s7  ;;  %v3839_v11 = vpop.permute.xlu0 %863  ;;  %v2215_v30 = vld [vmem:[#allocation2 + $0x8] sm:$0xff] }
 0x186   : > { %v2069_v17 = vrot.slane %v2061_v4, %v3163_v13 }
 0x187   : > { %v3847_v63 = vpop.permute.xlu1 %859  ;;  %1941 = vrot.lane.b32.xlu0 %v1856_v3, %s2733_s8 }
 0x188   : > { %v2079_v62 = vcombine.high %v2069_v17, %v2721_v0 }
 0x189   : > { %1741 = vrot.lane.b32.xlu1 %v1698_v60, %s2729_s29  ;;  %v3852_v45 = vpop.permute.xlu0 %1076  ;;  %v2217_v5 = vld [vmem:[#allocation2 + $0x18] sm:$0xff]  ;;  %v1919_v60 = vcombine.high %v1916_v40, %v2721_v0 }
 0x18a   : > { %v2454_v48 = vpack.c.bf16 %v2217_v5, %v2215_v30  ;;  %v2098_v30 = vcombine.high %v4203_v42, %v4202_v2  ;;  %v2114_v5 = vcombine.high %v2089_v44, %v2105_v22 }
 0x18b   : > { %v3856_v25 = vpop.permute.xlu1 %1060  ;;  %1725 = vrot.lane.b32.xlu0 %v1640_v54, %s2734_s16 }
 0x18c   : > { %2455 = vmatprep.subr.bf16.mxu0 %v2454_v48  ;;  %v4204_v48 = vld [vmem:[#allocation14_spill] sm:$0xff] }
 0x18d   : > { %1961 = vrot.lane.b32.xlu1 %v1918_v49, %s2729_s29  ;;  %v3861_v18 = vpop.permute.xlu0 %1264  ;;  %2558 = vmatpush1.bf16.msk.msra.mxu0 %vm3865_vm2, %v2557_v26  ;;  %v878_v19 = vsel %vm415_vm3, %v4204_v48, %v3661_v55  ;;  %v2121_v49 = vrot.slane %v2113_v20, %v3163_v13  ;;  %v2112_v26 = vrot.slane %v2098_v30, %v2960_v23 }
 0x18e   : > { %v879_v10 = vsel %vm417_vm4, %v878_v19, %v3674_v51  ;;  %v2128_v55 = vrot.slane %v2114_v5, %v3163_v13  ;;  %v4205_v51 = vld [vmem:[#allocation19_spill] sm:$0xff] }
 0x18f   : > { %v3878_v52 = vpop.permute.xlu1 %1080  ;;  %1945 = vrot.lane.b32.xlu0 %v1860_v35, %s2734_s16  ;;  %v880_v35 = vsel %vm419_vm5, %v879_v10, %v3740_v6  ;;  %v2129_v16 = vcombine.low %v2096_v24, %v2112_v26 }
 0x190   : > { %v881_v36 = vsel %vm421_vm6, %v880_v35, %v3801_v32 }
 0x191   : > { %1745 = vrot.lane.b32.xlu1 %v1696_v38, %s2735_s20  ;;  %v848_v34 = vpop.permute.xlu0 %847  ;;  %v882_v23 = vsel %vm423_vm7, %v881_v36, %v3827_v31  ;;  %v2138_v31 = vcombine.high %v2128_v55, %v2721_v0 }
 0x192   : > { %v883_v32 = vsel %vm425_vm8, %v882_v23, %v848_v34 }
 0x193   : > { %v3888_v37 = vpop.permute.xlu1 %1484  ;;  %2141 = vrot.lane.b32.xlu0 %v2077_v39, %s2726_s30  ;;  %v1095_v39 = vsel %vm415_vm3, %v4206_v59, %v4205_v51 }
 0x195   : > { %1965 = vrot.lane.b32.xlu1 %v1916_v40, %s2735_s20  ;;  %v1065_v46 = vpop.permute.xlu0 %1064  ;;  %v2137_v40 = vcombine.high %v2121_v49, %v2721_v0 }
 0x197   : > { %v3904_v47 = vpop.permute.xlu1 %867  ;;  %1749 = vrot.lane.b32.xlu0 %v1699_v8, %s2737_s6  ;;  %v1096_v8 = vsel %vm417_vm4, %v1095_v39, %v3700_v21 }
 0x198   : > { %v1097_v9 = vsel %vm419_vm5, %v1096_v8, %v3770_v29  ;;  %v2076_v29 = vrot.slane %v2062_v61, %v3163_v13  ;;  %v4207_v8 = vld [vmem:[#allocation15_spill] sm:$0xff] }
 0x199   : > { %1729 = vrot.lane.b32.xlu1 %v3760_v41, %s2736_s4  ;;  %v3911_v58 = vpop.permute.xlu0 %1268  ;;  %v2078_v41 = vcombine.high %v2060_v1, %v2721_v0  ;;  %v1098_v2 = vsel %vm421_vm6, %v1097_v9, %v3830_v56  ;;  %v887_v56 = vsel %vm433_vm9, %v3847_v63, %v3839_v11 }
 0x19a   : > { %v1099_v21 = vsel %vm423_vm7, %v1098_v2, %v3856_v25  ;;  %v888_v44 = vsel %vm435_vm14, %v887_v56, %v3904_v47  ;;  %v2080_v11 = vcombine.high %v2076_v29, %v2721_v0  ;;  %v4208_v2 = vld [vmem:[#allocation16_spill] sm:$0xff] }
 0x19b   : > { %v3917_v3 = vpop.permute.xlu1 %1084  ;;  %1969 = vrot.lane.b32.xlu0 %v1919_v60, %s2737_s6  ;;  %v1100_v4 = vsel %vm425_vm8, %v1099_v21, %v1065_v46 }
 0x19d   : > { %1949 = vrot.lane.b32.xlu1 %v3782_v33, %s2736_s4  ;;  %v852_v53 = vpop.permute.xlu0 %851 }
 0x19e   : > { %v884_v28 = vsel %vm427_vm10, %v883_v32, %v852_v53  ;;  %v1315_v32 = vsel %vm415_vm3, %v4207_v8, %v3861_v18 }
 0x19f   : > { %v3924_v54 = vpop.permute.xlu1 %1488  ;;  %2149 = vrot.lane.b32.xlu0 %v2078_v41, %s2728_s28  ;;  %v1316_v9 = vsel %vm417_vm4, %v1315_v32, %v3911_v58  ;;  %s2311_s28 = scalar_lea.sflag [#allocation5], %s2902_s18 }
 0x1a1   : > { %2145 = vrot.lane.b32.xlu1 %v2060_v1, %s2727_s27  ;;  %v1069_v33 = vpop.permute.xlu0 %1068  ;;  %v2136_v1 = vrot.slane %v2129_v16, %v3163_v13  ;;  %v1104_v13 = vsel %vm433_vm9, %v3852_v45, %v3878_v52 }
 0x1a2   : > { %v1101_v60 = vsel %vm427_vm10, %v1100_v4, %v1069_v33  ;;  %v1105_v50 = vsel %vm435_vm14, %v1104_v13, %v3917_v3 }
 0x1a3   : > { %v872_v12 = vpop.permute.xlu1 %871  ;;  %2157 = vrot.lane.b32.xlu0 %v2079_v62, %s2731_s25  ;;  %v2139_v20 = vcombine.high %v2136_v1, %v2721_v0 }
 0x1a4   : > { %v889_v53 = vsel %vm437_vm15, %v888_v44, %v872_v12 }
 0x1a5   : > { %2153 = vrot.lane.b32.xlu1 %v2069_v17, %s2730_s3  ;;  %v3945_v38 = vpop.permute.xlu0 %1272 }
 0x1a7   : > { %v1089_v6 = vpop.permute.xlu1 %1088  ;;  %2177 = vrot.lane.b32.xlu0 %v2128_v55, %s2732_s7 }
 0x1a8   : > { %v1106_v30 = vsel %vm437_vm15, %v1105_v50, %v1089_v6 }
 0x1a9   : > { %2173 = vrot.lane.b32.xlu1 %v2137_v40, %s2724_s21  ;;  %v856_v15 = vpop.permute.xlu0 %855  ;;  %s2453_s21 = sshll.u32 %s2707_s12, 8  ;;  %s2738_s12 = smov [#allocation8]  }
 0x1aa   : > { %v885_v42 = vsel %vm429_vm11, %v884_v28, %v856_v15  ;;  %v1317_v28 = vsel %vm419_vm5, %v1316_v9, %v3945_v38  ;;  %s2633_s3 = sshll.u32 %s2738_s12, 4  ;;  %s2634_s3 = int_to_ptr.vmem [resolvable:$false] %s2633_s3 }
 0x1ab   : > { %v886_v34 = vsel %vm431_vm12, %v885_v42, %v3847_v63  ;;  %v3974_v57 = vpop.permute.xlu1 %1492  ;;  %2181 = vrot.lane.b32.xlu0 %v2138_v31, %s2729_s29  ;;  %v1535_v42 = vsel %vm415_vm3, %v4208_v2, %v3888_v37  ;;  %s2629_s29 = scalar_lea.vmem %s4117_s26, 256  ;;  %s2635_s25 = scalar_lea.vmem %s2634_s3, 512 }
 0x1ac   : > { %v1536_v18 = vsel %vm417_vm4, %v1535_v42, %v3924_v54  ;;  %p2630_p8 = scmp.ne.s32.totalorder %s4117_s26, %s2629_s29  ;;  %p2636_p7 = scmp.lt.s32.totalorder %s4117_s26, %s2634_s3 }
 0x1ad   : > { %2161 = vrot.lane.b32.xlu1 %v2076_v29, %s2733_s8  ;;  %v1073_v25 = vpop.permute.xlu0 %1072  ;;  %v1537_v58 = vsel %vm419_vm5, %v1536_v18, %v3974_v57  ;;  %p2637_p10 = scmp.lt.s32.totalorder %s2635_s25, %s2629_s29 }
 0x1ae   : > { %v1102_v22 = vsel %vm429_vm11, %v1101_v60, %v1073_v25  ;;  %p2631_p11 = pnand %p2630_p8, %p4209_p0 }
 0x1af   : > { %v1103_v46 = vsel %vm431_vm12, %v1102_v22, %v3852_v45  ;;  %v876_v41 = vpop.permute.xlu1 %875  ;;  %2185 = vrot.lane.b32.xlu0 %v2136_v1, %s2735_s20  ;;  %p2638_p12 = por %p2637_p10, %p2636_p7 }
 0x1b0   : > { %v890_v63 = vsel %vm439_vm0, %v889_v53, %v876_v41  ;;  %v2560_v35 = vpack.c.bf16 %v1103_v46, %v886_v34  ;;  %p2632_p4 = pneg %p2631_p11 }
 0x1b1   : > { %v892_v47 = vsel %vm441_vm13, %v890_v63, 0.0  ;;  %2165 = vrot.lane.b32.xlu1 %v2080_v11, %s2734_s16  ;;  %v1277_v17 = vpop.permute.xlu0 %1276 }
 0x1b2   : > { %894 = vst.msk [vmem:[#allocation2 + $0x28] sm:$0xff] %vm445_vm1, %v892_v47  ;;  %v1318_v31 = vsel %vm421_vm6, %v1317_v28, %v1277_v17  ;;  %p2639_p9 = pnand %p2638_p12, %p2632_p4 }
 0x1b3   : > { %v1093_v5 = vpop.permute.xlu1 %1092  ;;  %2189 = vrot.lane.b32.xlu0 %v2139_v20, %s2737_s6 }
 0x1b4   : > { %v1107_v33 = vsel %vm439_vm0, %v1106_v30, %v1093_v5 }
 0x1b5   : > { %v1109_v45 = vsel %vm441_vm13, %v1107_v33, 0.0  ;;  %2169 = vrot.lane.b32.xlu1 %v2121_v49, %s2736_s4  ;;  %v1281_v52 = vpop.permute.xlu0 %1280 }
 0x1b6   : > { %1111 = vst.msk [vmem:[#allocation2 + $0x38] sm:$0xff] %vm445_vm1, %v1109_v45  ;;  %v1319_v21 = vsel %vm423_vm7, %v1318_v31, %v1281_v52 }
 0x1b7   : > { %v1497_v0 = vpop.permute.xlu1 %1496 }
 0x1b8   : > { %v1538_v56 = vsel %vm421_vm6, %v1537_v58, %v1497_v0 }
 0x1b9   : > { %v1301_v62 = vpop.permute.xlu0 %1300  ;;  %v2219_v19 = vld [vmem:[#allocation2 + $0x28] sm:$0xff] }
 0x1bb   : > { %v1297_v48 = vpop.permute.xlu1 %1296 }
 0x1bc   : > { %v1324_v54 = vsel %vm433_vm9, %v1297_v48, %v1301_v62 }
 0x1bd   : > { %v1517_v3 = vpop.permute.xlu0 %1516  ;;  %v2221_v12 = vld [vmem:[#allocation2 + $0x38] sm:$0xff] }
 0x1be   : > { %v2458_v10 = vpack.c.bf16 %v2221_v12, %v2219_v19 }
 0x1bf   : > { %v1501_v24 = vpop.permute.xlu1 %1500 }
 0x1c0   : > { %2459 = vmatprep.subr.bf16.mxu0 %v2458_v10  ;;  %v1539_v37 = vsel %vm423_vm7, %v1538_v56, %v1501_v24 }
 0x1c1   : > { %v4009_v26 = vpop.permute.xlu0 %1701  ;;  %2561 = vmatpush1.bf16.msk.msra.mxu0 %vm3865_vm2, %v2560_v35 }
 0x1c2   : > { %v1752_v32 = vsel %vm415_vm3, %v3595_v7, %v4009_v26 }
 0x1c3   : > { %v1521_v55 = vpop.permute.xlu1 %1520 }
 0x1c4   : > { %v1544_v47 = vsel %vm433_vm9, %v1517_v3, %v1521_v55 }
 0x1c5   : > { %v1285_v49 = vpop.permute.xlu0 %1284 }
 0x1c6   : > { %v1320_v29 = vsel %vm425_vm8, %v1319_v21, %v1285_v49 }
 0x1c7   : > { %v4013_v36 = vpop.permute.xlu1 %1921 }
 0x1c9   : > { %v1505_v61 = vpop.permute.xlu0 %1504 }
 0x1ca   : > { %v1540_v44 = vsel %vm425_vm8, %v1539_v37, %v1505_v61 }
 0x1cb   : > { %v1305_v51 = vpop.permute.xlu1 %1304 }
 0x1cc   : > { %v1325_v57 = vsel %vm435_vm14, %v1324_v54, %v1305_v51 }
 0x1cd   : > { %v4015_v59 = vpop.permute.xlu0 %1705 }
 0x1ce   : > { %v1753_v9 = vsel %vm417_vm4, %v1752_v32, %v4015_v59 }
 0x1cf   : > { %v1525_v39 = vpop.permute.xlu1 %1524 }
 0x1d0   : > { %v1545_v50 = vsel %vm435_vm14, %v1544_v47, %v1525_v39 }
 0x1d1   : > { %v1289_v23 = vpop.permute.xlu0 %1288 }
 0x1d2   : > { %v1321_v38 = vsel %vm427_vm10, %v1320_v29, %v1289_v23 }
 0x1d3   : > { %v4017_v6 = vpop.permute.xlu1 %1925 }
 0x1d5   : > { %v1509_v40 = vpop.permute.xlu0 %1508 }
 0x1d6   : > { %v1541_v22 = vsel %vm427_vm10, %v1540_v44, %v1509_v40 }
 0x1d7   : > { %v1309_v16 = vpop.permute.xlu1 %1308 }
 0x1d8   : > { %v1326_v41 = vsel %vm437_vm15, %v1325_v57, %v1309_v16 }
 0x1d9   : > { %v1710_v15 = vpop.permute.xlu0 %1709 }
 0x1da   : > { %v1754_v28 = vsel %vm419_vm5, %v1753_v9, %v1710_v15 }
 0x1db   : > { %v1529_v34 = vpop.permute.xlu1 %1528 }
 0x1dc   : > { %v1546_v30 = vsel %vm437_vm15, %v1545_v50, %v1529_v34  ;;  %v1972_v34 = vsel %vm415_vm3, %v3618_v43, %v4013_v36 }
 0x1dd   : > { %v1293_v4 = vpop.permute.xlu0 %1292  ;;  %v1973_v59 = vsel %vm417_vm4, %v1972_v34, %v4017_v6 }
 0x1de   : > { %v1322_v60 = vsel %vm429_vm11, %v1321_v38, %v1293_v4 }
 0x1df   : > { %v1323_v25 = vsel %vm431_vm12, %v1322_v60, %v1297_v48  ;;  %v1930_v1 = vpop.permute.xlu1 %1929 }
 0x1e0   : > { %v1974_v58 = vsel %vm419_vm5, %v1973_v59, %v1930_v1 }
 0x1e1   : > { %v1513_v53 = vpop.permute.xlu0 %1512 }
 0x1e2   : > { %v1542_v46 = vsel %vm429_vm11, %v1541_v22, %v1513_v53 }
 0x1e3   : > { %v1543_v11 = vsel %vm431_vm12, %v1542_v46, %v1517_v3  ;;  %v1313_v63 = vpop.permute.xlu1 %1312 }
 0x1e4   : > { %v1327_v13 = vsel %vm439_vm0, %v1326_v41, %v1313_v63  ;;  %v2563_v55 = vpack.c.bf16 %v1543_v11, %v1323_v25 }
 0x1e5   : > { %v1329_v17 = vsel %vm441_vm13, %v1327_v13, 0.0  ;;  %v1714_v20 = vpop.permute.xlu0 %1713 }
 0x1e6   : > { %1331 = vst.msk [vmem:[#allocation2 + $0x48] sm:$0xff] %vm445_vm1, %v1329_v17  ;;  %v1755_v42 = vsel %vm421_vm6, %v1754_v28, %v1714_v20 }
 0x1e7   : > { %v1533_v5 = vpop.permute.xlu1 %1532 }
 0x1e8   : > { %v1547_v33 = vsel %vm439_vm0, %v1546_v30, %v1533_v5 }
 0x1e9   : > { %v1549_v45 = vsel %vm441_vm13, %v1547_v33, 0.0  ;;  %v1718_v52 = vpop.permute.xlu0 %1717 }
 0x1ea   : > { %1551 = vst.msk [vmem:[#allocation2 + $0x58] sm:$0xff] %vm445_vm1, %v1549_v45  ;;  %v1756_v18 = vsel %vm423_vm7, %v1755_v42, %v1718_v52 }
 0x1eb   : > { %v1934_v0 = vpop.permute.xlu1 %1933 }
 0x1ec   : > { %v1975_v56 = vsel %vm421_vm6, %v1974_v58, %v1934_v0 }
 0x1ed   : > { %v1738_v62 = vpop.permute.xlu0 %1737  ;;  %v2223_v19 = vld [vmem:[#allocation2 + $0x48] sm:$0xff] }
 0x1ef   : > { %v1734_v48 = vpop.permute.xlu1 %1733 }
 0x1f0   : > { %v1761_v31 = vsel %vm433_vm9, %v1734_v48, %v1738_v62 }
 0x1f1   : > { %v1954_v3 = vpop.permute.xlu0 %1953  ;;  %v2225_v12 = vld [vmem:[#allocation2 + $0x58] sm:$0xff] }
 0x1f2   : > { %v2462_v10 = vpack.c.bf16 %v2225_v12, %v2223_v19 }
 0x1f3   : > { %v1938_v24 = vpop.permute.xlu1 %1937 }
 0x1f4   : > { %2463 = vmatprep.subr.bf16.mxu0 %v2462_v10  ;;  %v1976_v37 = vsel %vm423_vm7, %v1975_v56, %v1938_v24 }
 0x1f5   : > { %v1722_v35 = vpop.permute.xlu0 %1721  ;;  %2564 = vmatpush1.bf16.msk.msra.mxu0 %vm3865_vm2, %v2563_v55 }
 0x1f6   : > { %v1757_v15 = vsel %vm425_vm8, %v1756_v18, %v1722_v35 }
 0x1f7   : > { %v1958_v49 = vpop.permute.xlu1 %1957 }
 0x1f8   : > { %v1981_v38 = vsel %vm433_vm9, %v1954_v3, %v1958_v49 }
 0x1f9   : > { %v1942_v61 = vpop.permute.xlu0 %1941 }
 0x1fa   : > { %v1977_v54 = vsel %vm425_vm8, %v1976_v37, %v1942_v61 }
 0x1fb   : > { %v1742_v51 = vpop.permute.xlu1 %1741 }
 0x1fc   : > { %v1762_v21 = vsel %vm435_vm14, %v1761_v31, %v1742_v51 }
 0x1fd   : > { %v1726_v39 = vpop.permute.xlu0 %1725 }
 0x1fe   : > { %v1758_v4 = vsel %vm427_vm10, %v1757_v15, %v1726_v39 }
 0x1ff   : > { %v1962_v23 = vpop.permute.xlu1 %1961 }
 0x200   : > { %v1982_v60 = vsel %vm435_vm14, %v1981_v38, %v1962_v23 }
 0x201   : > { %v1946_v40 = vpop.permute.xlu0 %1945 }
 0x202   : > { %v1978_v53 = vsel %vm427_vm10, %v1977_v54, %v1946_v40 }
 0x203   : > { %v1746_v8 = vpop.permute.xlu1 %1745 }
 0x204   : > { %v1763_v7 = vsel %vm437_vm15, %v1762_v21, %v1746_v8 }
 0x205   : > { %v2142_v16 = vpop.permute.xlu0 %2141 }
 0x206   : > { %v2192_v52 = vsel %vm415_vm3, %v3876_v14, %v2142_v16  ;;  %v2232_v16 = vld [vmem:[%s2912_s19] sm:$0xff]  ;;  %vm2233_vm3 = vcmask 588800   ;;  %s4122_s19 = scalar_lea.hbm %s4171_s2, %s2453_s21 }
 0x207   : > { %v1966_v2 = vpop.permute.xlu1 %1965 }
 0x208   : > { %v1983_v25 = vsel %vm437_vm15, %v1982_v60, %v1966_v2 }
 0x209   : > { %v1750_v26 = vpop.permute.xlu0 %1749 }
 0x20a   : > { %v1764_v29 = vsel %vm439_vm0, %v1763_v7, %v1750_v26 }
 0x20b   : > { %v1766_v43 = vsel %vm441_vm13, %v1764_v29, 0.0  ;;  %v1730_v36 = vpop.permute.xlu1 %1729 }
 0x20c   : > { %1768 = vst.msk [vmem:[#allocation2 + $0x68] sm:$0xff] %vm445_vm1, %v1766_v43  ;;  %v1759_v6 = vsel %vm429_vm11, %v1758_v4, %v1730_v36 }
 0x20d   : > { %v1760_v1 = vsel %vm431_vm12, %v1759_v6, %v1734_v48  ;;  %v1970_v44 = vpop.permute.xlu0 %1969 }
 0x20e   : > { %v1984_v22 = vsel %vm439_vm0, %v1983_v25, %v1970_v44 }
 0x20f   : > { %v1986_v57 = vsel %vm441_vm13, %v1984_v22, 0.0  ;;  %v1950_v46 = vpop.permute.xlu1 %1949 }
 0x210   : > { %1988 = vst.msk [vmem:[#allocation2 + $0x78] sm:$0xff] %vm445_vm1, %v1986_v57  ;;  %v1979_v41 = vsel %vm429_vm11, %v1978_v53, %v1950_v46 }
 0x211   : > { %v1980_v11 = vsel %vm431_vm12, %v1979_v41, %v1954_v3  ;;  %v2150_v63 = vpop.permute.xlu0 %2149 }
 0x212   : > { %v2566_v45 = vpack.c.bf16 %v1980_v11, %v1760_v1 }
 0x213   : > { %v2146_v13 = vpop.permute.xlu1 %2145  ;;  %v2227_v20 = vld [vmem:[#allocation2 + $0x68] sm:$0xff] }
 0x214   : > { %v2193_v62 = vsel %vm417_vm4, %v2192_v52, %v2146_v13 }
 0x215   : > { %v2158_v47 = vpop.permute.xlu0 %2157  ;;  %v2194_v3 = vsel %vm419_vm5, %v2193_v62, %v2150_v63 }
 0x217   : > { %v2154_v17 = vpop.permute.xlu1 %2153  ;;  %v2229_v50 = vld [vmem:[#allocation2 + $0x78] sm:$0xff] }
 0x218   : > { %v2466_v30 = vpack.c.bf16 %v2229_v50, %v2227_v20  ;;  %v2195_v10 = vsel %vm421_vm6, %v2194_v3, %v2154_v17 }
 0x219   : > { %v2178_v5 = vpop.permute.xlu0 %2177  ;;  %v2196_v27 = vsel %vm423_vm7, %v2195_v10, %v2158_v47 }
 0x21a   : > { %2467 = vmatprep.subr.bf16.mxu0 %v2466_v30 }
 0x21b   : > { %v2174_v33 = vpop.permute.xlu1 %2173  ;;  %2567 = vmatpush1.bf16.msk.msra.mxu0 %vm3865_vm2, %v2566_v45 }
 0x21c   : > { %v2201_v19 = vsel %vm433_vm9, %v2174_v33, %v2178_v5 }
 0x21d   : > { %v2182_v0 = vpop.permute.xlu0 %2181 }
 0x21e   : > { %v2202_v35 = vsel %vm435_vm14, %v2201_v19, %v2182_v0 }
 0x21f   : > { %v2162_v48 = vpop.permute.xlu1 %2161 }
 0x220   : > { %v2197_v49 = vsel %vm425_vm8, %v2196_v27, %v2162_v48 }
 0x221   : > { %v2186_v12 = vpop.permute.xlu0 %2185 }
 0x222   : > { %v2203_v55 = vsel %vm437_vm15, %v2202_v35, %v2186_v12 }
 0x223   : > { %v2166_v24 = vpop.permute.xlu1 %2165 }
 0x224   : > { %v2198_v51 = vsel %vm427_vm10, %v2197_v49, %v2166_v24 }
 0x225   : > { %v2190_v14 = vpop.permute.xlu0 %2189 }
 0x226   : > { %v2204_v61 = vsel %vm439_vm0, %v2203_v55, %v2190_v14 }
 0x227   : > { %v2206_v39 = vsel %vm441_vm13, %v2204_v61, 0.0  ;;  %v2170_v23 = vpop.permute.xlu1 %2169 }
 0x228   : > { %2208 = vst.msk [vmem:[#allocation2 + $0x88] sm:$0xff] %vm445_vm1, %v2206_v39  ;;  %v2199_v40 = vsel %vm429_vm11, %v2198_v51, %v2170_v23 }
 0x229   : > { %v2200_v8 = vsel %vm431_vm12, %v2199_v40, %v2174_v33 }
 0x22f   : > { %v2231_v32 = vld [vmem:[#allocation2 + $0x88] sm:$0xff] }
 0x230   : > { %2253 = vmatprep.subr.mxu0 %v2231_v32 }
 0x231   : > { %2568 = vmatpush1.msk.msra.mxu0 %vm441_vm13, %v2200_v8 }
 0x232   : > { %2446 = vmatmul.mubr.msk.f32.vlgmr.msra.gmra.mrb[0].mxu0 %vm2233_vm3, %v2232_v16 }
 0x305   : > { %v2303_v9 = vpop.f32.mrb[0].mxu0 }
 0x306   : > { %2308 = vst [vmem:[%s212_s15] sm:$0xff] %v2303_v9  ;;  %v2305_v28 = vpop.f32.mrb[1].mxu0 }
 0x307   : > { %2309 = vst [vmem:[%s212_s15 + $0x8] sm:$0xff] %v2305_v28 }
 0x308   : > { %2642 = shalt.err (!%p2639_p9)
}
 0x309   : > { %s2643_s18 = scalar_lea.hbm %s4122_s19, 256  ;;  %s2647_s16 = scalar_lea.hbm %s4171_s2, 512 }
 0x30a   : > { %p2644_p1 = scmp.ne.s32.totalorder %s4122_s19, %s2643_s18  ;;  %p2648_p5 = scmp.lt.u32.totalorder %s4122_s19, %s4171_s2 }
 0x30b   : > { %p2649_p13 = scmp.lt.u32.totalorder %s2647_s16, %s2643_s18  ;;  %p2651_p8 = scmp.lt.u32.totalorder %s2643_s18, %s4122_s19 }
 0x30c   : > { %p2645_p6 = pnand %p2644_p1, %p4209_p0 }
 0x30d   : > { %p2650_p3 = por %p2649_p13, %p2648_p5 }
 0x30e   : > { %p2646_p2 = pneg %p2645_p6 }
 0x30f   : > { %p2652_p11 = por %p2651_p8, %p2650_p3 }
 0x311   : > { %p2653_p4 = pnand %p2652_p11, %p2646_p2 }
 0x313   : > { %2656 = shalt.err (!%p2653_p4)
}
 0x314   : > { %2474 = dma.vmem_to_hbm [thread:$0]  (%p4209_p0), %s4117_s26, 256, %s4122_s19, %s2311_s28  }
 0x315 PF: > { %s2339_s6 = sand.u32 1, %s2695_s9   ;;  %p4210_p7 = scmp.ne.s32.totalorder %s4184_s24, 0 }
 0x316   : > { %p4211_p10 = scmp.ge.s32.totalorder %s2715_s14, 2  ;;  %s2340_s5 = scalar_lea.sflag [#allocation5], %s2339_s6 }
 0x318   : > { %p2484_p12 = pnand %p4211_p10, %p4210_p7 }
 0x31a   : > { %2690 = dma.done.wait (!%p2484_p12), %s2340_s5, 256  }
 0x31b   : > { %2692 = vsyncadd (!%p2484_p12), %s2340_s5, 4294967040  ;;  %s21_s14 = sadd.s32 1, %s2715_s14   ;;  %s4212_s9 = smov %s2699_s10 }
 0x31c   : > { %p18_p9 = scmp.ge.s32.totalorder %s21_s14, 4   ;;  %s4213_s10 = smov %s2703_s11 }
 0x31d   : > { %s4214_s11 = smov %s2810_s23  ;;  %s4215_s12 = smov %s2711_s13 }
 0x31e   : > { %s4216_s13 = smov %s4218_s17  ;;  %20 = sbr.rel (!%p18_p9) target bundleno = 8 (0x8), region = 91 }
 0x325   :  { %2345 = vsyncpa [#allocation4], 1 }
 0x326   :  { %2347 = vsyncpa [#allocation4 + $0x1], 1 }
 0x327   :  { %2348 = vsyncpa [#allocation7], 1 }
 0x328   :  { %2350 = vsyncpa [#allocation7 + $0x1], 1 }
 0x329   :  { %2351 = vsyncpa [#allocation5], 1 }
 0x32a   :  { %2353 = vsyncpa [#allocation5 + $0x1], 1 }

</bundles_post_ra>
